<compile_context>
chip_gen: v6e
topology: v6e:2x2x1
jax: 0.10.0
libtpu: 0.0.40
codegen_flags: <defaults>
</compile_context>

<pallas_src>
import functools

import jax
import jax.numpy as jnp
from jax.experimental import pallas as pl
from jax.experimental.pallas import tpu as pltpu


# ------------------------- fused forward kernel ----------------------------
def _fused_kernel(p1_ref, p2_ref, pool_ref,
                  cw1_ref, cb1_ref, fw1_ref, fb1_ref,
                  cw2_ref, cb2_ref, fw2_ref, fb2_ref,
                  w1_ref, b1_ref, w2_ref, b2_ref,
                  w3a_ref, w3b_ref, b3_ref,
                  wmv_ref, bmv_ref,
                  out_ref):
    # p1_ref / p2_ref : (B*HW, K)     im2col patches for img1 / img2
    # pool_ref        : (B, B*HW)     block-diagonal 1/HW pooling matrix
    # cw*, cb*, fw*, fb* : per-encoder conv-as-matmul + fc weights
    # w1,b1,w2,b2,w3a,w3b,b3 : head fc1 / fc2 / fc3 (fc3 split along concat rows)
    # wmv, bmv        : (L, 2L), (1, 2L)  mean|logvar weights packed along lanes
    # out_ref         : (B, 2L)       [mean | logvar] packed along lanes
    pool = pool_ref[...]

    # ---- encoder 1: conv(3x3, same) -> ReLU -> global mean pool -> fc -> ReLU
    y1 = jnp.dot(p1_ref[...], cw1_ref[...], preferred_element_type=jnp.float32)
    y1 = jnp.maximum(y1 + cb1_ref[...], 0.0)                     # (B*HW, Cenc)
    pooled1 = jnp.dot(pool, y1, preferred_element_type=jnp.float32)   # MXU pool (B, Cenc)
    f1 = jnp.dot(pooled1, fw1_ref[...], preferred_element_type=jnp.float32) + fb1_ref[...]
    f1 = jnp.maximum(f1, 0.0)                                    # (B, L)

    # ---- encoder 2
    y2 = jnp.dot(p2_ref[...], cw2_ref[...], preferred_element_type=jnp.float32)
    y2 = jnp.maximum(y2 + cb2_ref[...], 0.0)
    pooled2 = jnp.dot(pool, y2, preferred_element_type=jnp.float32)
    f2 = jnp.dot(pooled2, fw2_ref[...], preferred_element_type=jnp.float32) + fb2_ref[...]
    f2 = jnp.maximum(f2, 0.0)                                    # (B, L)

    # ---- head (dropout1 / dropout2 are identity in inference mode)
    h1 = jnp.dot(f1, w1_ref[...], preferred_element_type=jnp.float32) + b1_ref[...]
    h1 = jnp.maximum(h1, 0.0)                                    # relu(fc1(img1))
    h2 = jnp.dot(f2, w2_ref[...], preferred_element_type=jnp.float32) + b2_ref[...]
    h2 = jnp.maximum(h2, 0.0)                                    # relu(fc2(img2))
    # concat(h1, h2) @ fc3  ==  h1 @ w3a + h2 @ w3b
    x = (jnp.dot(h1, w3a_ref[...], preferred_element_type=jnp.float32)
         + jnp.dot(h2, w3b_ref[...], preferred_element_type=jnp.float32)
         + b3_ref[...])                                          # (B, L)
    # mean | logvar computed in one lane-dense matmul, leaky_relu slope 0.01
    mv = jnp.dot(x, wmv_ref[...], preferred_element_type=jnp.float32) + bmv_ref[...]
    out_ref[...] = jnp.where(mv >= 0.0, mv, 0.01 * mv)           # (B, 2L)


# --------------------------------- glue ------------------------------------
def im2col_3x3(x_nhwc):
    """3x3, pad=1, stride=1 im2col.  (B,H,W,C) -> (B*H*W, 9*C)."""
    B, H, W, C = x_nhwc.shape
    xp = jnp.pad(x_nhwc, ((0, 0), (1, 1), (1, 1), (0, 0)))
    cols = []
    for dh in range(3):
        for dw in range(3):
            cols.append(xp[:, dh:dh + H, dw:dw + W, :])
    patches = jnp.concatenate(cols, axis=-1)          # (B, H, W, 9C) order (dh, dw, cin)
    return patches.reshape(B * H * W, 9 * C)


def make_params(key, latent_dim, percent_second, cin, cenc):
    ks = jax.random.split(key, 16)
    out1 = int(latent_dim * (1 - percent_second))
    out2 = latent_dim - out1

    def lin(k, fan_in, fan_out):
        return jax.random.normal(k, (fan_in, fan_out), jnp.float32) * 0.02

    def enc_params(k0, k1, k2, k3):
        # conv weight stored directly in im2col-matmul layout (9*cin, cenc)
        conv_w = jax.random.normal(k0, (9 * cin, cenc), jnp.float32) * 0.02
        conv_b = jax.random.normal(k1, (1, cenc), jnp.float32) * 0.02
        fc_w = lin(k2, cenc, latent_dim)
        fc_b = jax.random.normal(k3, (1, latent_dim), jnp.float32) * 0.02
        return conv_w, conv_b, fc_w, fc_b

    enc1 = enc_params(ks[0], ks[1], ks[2], ks[3])
    enc2 = enc_params(ks[4], ks[5], ks[6], ks[7])

    w3 = lin(ks[10], 2 * latent_dim, latent_dim)      # fc3: (2L, L)
    wm = lin(ks[14], latent_dim, latent_dim)
    wv = lin(ks[15], latent_dim, latent_dim)
    head = dict(
        w1=lin(ks[8], latent_dim, 2 * out1),
        b1=jax.random.normal(ks[9], (1, 2 * out1), jnp.float32) * 0.02,
        w2=lin(ks[11], latent_dim, 2 * out2),
        b2=jax.random.normal(ks[12], (1, 2 * out2), jnp.float32) * 0.02,
        w3a=w3[: 2 * out1, :],                        # rows matching the h1 part of the concat
        w3b=w3[2 * out1:, :],                         # rows matching the h2 part of the concat
        b3=jax.random.normal(ks[13], (1, latent_dim), jnp.float32) * 0.02,
        # mean / logvar weights packed along lanes -> lane-dense (B, 2L) output
        wmv=jnp.concatenate([wm, wv], axis=1),        # (L, 2L)
        bmv=jnp.zeros((1, 2 * latent_dim), jnp.float32),
    )
    return enc1, enc2, head


@functools.partial(jax.jit, static_argnames=("latent_dim",))
def dual_image_generator_forward(img1_nhwc, img2_nhwc, enc1, enc2, head, latent_dim):
    B, H, W, _ = img1_nhwc.shape
    HW = H * W
    p1 = im2col_3x3(img1_nhwc)                        # (B*HW, 9*Cin)
    p2 = im2col_3x3(img2_nhwc)
    # block-diagonal pooling matrix: pool @ y == per-image mean over HW rows
    pool = jnp.kron(jnp.eye(B, dtype=jnp.float32),
                    jnp.full((1, HW), 1.0 / HW, jnp.float32))     # (B, B*HW)

    vmem_spec = pl.BlockSpec(memory_space=pltpu.MemorySpace.VMEM)
    out = pl.pallas_call(
        _fused_kernel,
        out_shape=jax.ShapeDtypeStruct((B, 2 * latent_dim), jnp.float32),
        in_specs=[vmem_spec] * 20,
        out_specs=vmem_spec,
    )(p1, p2, pool,
      enc1[0], enc1[1], enc1[2], enc1[3],
      enc2[0], enc2[1], enc2[2], enc2[3],
      head["w1"], head["b1"], head["w2"], head["b2"],
      head["w3a"], head["w3b"], head["b3"],
      head["wmv"], head["bmv"])

    mean = out[:, :latent_dim]
    logvar = out[:, latent_dim:]
    return mean, logvar


if __name__ == "__main__":
    LATENT_DIM = 32
    PERCENT_SECOND = 0.2
    B, H, W, CIN = 2, 16, 16, 3
    CENC = 8

    key = jax.random.PRNGKey(0)
    k_img1, k_img2, k_params = jax.random.split(key, 3)
    img1 = jax.random.normal(k_img1, (B, H, W, CIN), jnp.float32)   # NHWC (torch would be NCHW)
    img2 = jax.random.normal(k_img2, (B, H, W, CIN), jnp.float32)

    enc1, enc2, head = make_params(k_params, LATENT_DIM, PERCENT_SECOND, CIN, CENC)

    mean, logvar = dual_image_generator_forward(img1, img2, enc1, enc2, head, LATENT_DIM)
    jax.block_until_ready((mean, logvar))

    assert mean.shape == (B, LATENT_DIM) and logvar.shape == (B, LATENT_DIM)
    assert bool(jnp.all(jnp.isfinite(mean))) and bool(jnp.all(jnp.isfinite(logvar)))
    print("KERNEL_OK")
</pallas_src>

<mosaic_0001>
module attributes {stable_mosaic.version = 11 : i64} {
  func.func @_fused_kernel(%arg0: memref<512x27xf32, #tpu.memory_space<vmem>>, %arg1: memref<512x27xf32, #tpu.memory_space<vmem>>, %arg2: memref<2x512xf32, #tpu.memory_space<vmem>>, %arg3: memref<27x8xf32, #tpu.memory_space<vmem>>, %arg4: memref<1x8xf32, #tpu.memory_space<vmem>>, %arg5: memref<8x32xf32, #tpu.memory_space<vmem>>, %arg6: memref<1x32xf32, #tpu.memory_space<vmem>>, %arg7: memref<27x8xf32, #tpu.memory_space<vmem>>, %arg8: memref<1x8xf32, #tpu.memory_space<vmem>>, %arg9: memref<8x32xf32, #tpu.memory_space<vmem>>, %arg10: memref<1x32xf32, #tpu.memory_space<vmem>>, %arg11: memref<32x50xf32, #tpu.memory_space<vmem>>, %arg12: memref<1x50xf32, #tpu.memory_space<vmem>>, %arg13: memref<32x14xf32, #tpu.memory_space<vmem>>, %arg14: memref<1x14xf32, #tpu.memory_space<vmem>>, %arg15: memref<50x32xf32, #tpu.memory_space<vmem>>, %arg16: memref<14x32xf32, #tpu.memory_space<vmem>>, %arg17: memref<1x32xf32, #tpu.memory_space<vmem>>, %arg18: memref<32x64xf32, #tpu.memory_space<vmem>>, %arg19: memref<1x64xf32, #tpu.memory_space<vmem>>, %arg20: memref<2x64xf32, #tpu.memory_space<vmem>>) attributes {dimension_semantics = [], scalar_prefetch = 0 : i64, scratch_operands = 0 : i64, tpu.core_type = #tpu.core_type<tc>} {
    %c0 = arith.constant 0 : index
    %c0_0 = arith.constant 0 : index
    %0 = vector.load %arg2[%c0, %c0_0] : memref<2x512xf32, #tpu.memory_space<vmem>>, vector<2x512xf32>
    %c0_1 = arith.constant 0 : index
    %c0_2 = arith.constant 0 : index
    %1 = vector.load %arg0[%c0_1, %c0_2] : memref<512x27xf32, #tpu.memory_space<vmem>>, vector<512x27xf32>
    %c0_3 = arith.constant 0 : index
    %c0_4 = arith.constant 0 : index
    %2 = vector.load %arg3[%c0_3, %c0_4] : memref<27x8xf32, #tpu.memory_space<vmem>>, vector<27x8xf32>
    %cst = arith.constant dense<0.000000e+00> : vector<512x8xf32>
    %3 = tpu.matmul %1, %2, %cst {dimension_numbers = #tpu.dot_dimension_numbers<[1], [0], [0], [1], [0, 0, 1, 1], [], []>} : vector<512x27xf32>, vector<27x8xf32>, vector<512x8xf32> -> vector<512x8xf32>
    %c0_5 = arith.constant 0 : index
    %c0_6 = arith.constant 0 : index
    %4 = vector.load %arg4[%c0_5, %c0_6] : memref<1x8xf32, #tpu.memory_space<vmem>>, vector<1x8xf32>
    %5 = vector.broadcast %4 : vector<1x8xf32> to vector<512x8xf32>
    %6 = arith.addf %3, %5 : vector<512x8xf32>
    %cst_7 = arith.constant 0.000000e+00 : f32
    %7 = vector.broadcast %cst_7 : f32 to vector<512x8xf32>
    %8 = arith.maximumf %6, %7 : vector<512x8xf32>
    %cst_8 = arith.constant dense<0.000000e+00> : vector<2x8xf32>
    %9 = tpu.matmul %0, %8, %cst_8 {dimension_numbers = #tpu.dot_dimension_numbers<[1], [0], [0], [1], [0, 0, 1, 1], [], []>} : vector<2x512xf32>, vector<512x8xf32>, vector<2x8xf32> -> vector<2x8xf32>
    %c0_9 = arith.constant 0 : index
    %c0_10 = arith.constant 0 : index
    %10 = vector.load %arg5[%c0_9, %c0_10] : memref<8x32xf32, #tpu.memory_space<vmem>>, vector<8x32xf32>
    %cst_11 = arith.constant dense<0.000000e+00> : vector<2x32xf32>
    %11 = tpu.matmul %9, %10, %cst_11 {dimension_numbers = #tpu.dot_dimension_numbers<[1], [0], [0], [1], [0, 0, 1, 1], [], []>} : vector<2x8xf32>, vector<8x32xf32>, vector<2x32xf32> -> vector<2x32xf32>
    %c0_12 = arith.constant 0 : index
    %c0_13 = arith.constant 0 : index
    %12 = vector.load %arg6[%c0_12, %c0_13] : memref<1x32xf32, #tpu.memory_space<vmem>>, vector<1x32xf32>
    %13 = vector.broadcast %12 : vector<1x32xf32> to vector<2x32xf32>
    %14 = arith.addf %11, %13 : vector<2x32xf32>
    %cst_14 = arith.constant 0.000000e+00 : f32
    %15 = vector.broadcast %cst_14 : f32 to vector<2x32xf32>
    %16 = arith.maximumf %14, %15 : vector<2x32xf32>
    %c0_15 = arith.constant 0 : index
    %c0_16 = arith.constant 0 : index
    %17 = vector.load %arg1[%c0_15, %c0_16] : memref<512x27xf32, #tpu.memory_space<vmem>>, vector<512x27xf32>
    %c0_17 = arith.constant 0 : index
    %c0_18 = arith.constant 0 : index
    %18 = vector.load %arg7[%c0_17, %c0_18] : memref<27x8xf32, #tpu.memory_space<vmem>>, vector<27x8xf32>
    %cst_19 = arith.constant dense<0.000000e+00> : vector<512x8xf32>
    %19 = tpu.matmul %17, %18, %cst_19 {dimension_numbers = #tpu.dot_dimension_numbers<[1], [0], [0], [1], [0, 0, 1, 1], [], []>} : vector<512x27xf32>, vector<27x8xf32>, vector<512x8xf32> -> vector<512x8xf32>
    %c0_20 = arith.constant 0 : index
    %c0_21 = arith.constant 0 : index
    %20 = vector.load %arg8[%c0_20, %c0_21] : memref<1x8xf32, #tpu.memory_space<vmem>>, vector<1x8xf32>
    %21 = vector.broadcast %20 : vector<1x8xf32> to vector<512x8xf32>
    %22 = arith.addf %19, %21 : vector<512x8xf32>
    %cst_22 = arith.constant 0.000000e+00 : f32
    %23 = vector.broadcast %cst_22 : f32 to vector<512x8xf32>
    %24 = arith.maximumf %22, %23 : vector<512x8xf32>
    %cst_23 = arith.constant dense<0.000000e+00> : vector<2x8xf32>
    %25 = tpu.matmul %0, %24, %cst_23 {dimension_numbers = #tpu.dot_dimension_numbers<[1], [0], [0], [1], [0, 0, 1, 1], [], []>} : vector<2x512xf32>, vector<512x8xf32>, vector<2x8xf32> -> vector<2x8xf32>
    %c0_24 = arith.constant 0 : index
    %c0_25 = arith.constant 0 : index
    %26 = vector.load %arg9[%c0_24, %c0_25] : memref<8x32xf32, #tpu.memory_space<vmem>>, vector<8x32xf32>
    %cst_26 = arith.constant dense<0.000000e+00> : vector<2x32xf32>
    %27 = tpu.matmul %25, %26, %cst_26 {dimension_numbers = #tpu.dot_dimension_numbers<[1], [0], [0], [1], [0, 0, 1, 1], [], []>} : vector<2x8xf32>, vector<8x32xf32>, vector<2x32xf32> -> vector<2x32xf32>
    %c0_27 = arith.constant 0 : index
    %c0_28 = arith.constant 0 : index
    %28 = vector.load %arg10[%c0_27, %c0_28] : memref<1x32xf32, #tpu.memory_space<vmem>>, vector<1x32xf32>
    %29 = vector.broadcast %28 : vector<1x32xf32> to vector<2x32xf32>
    %30 = arith.addf %27, %29 : vector<2x32xf32>
    %cst_29 = arith.constant 0.000000e+00 : f32
    %31 = vector.broadcast %cst_29 : f32 to vector<2x32xf32>
    %32 = arith.maximumf %30, %31 : vector<2x32xf32>
    %c0_30 = arith.constant 0 : index
    %c0_31 = arith.constant 0 : index
    %33 = vector.load %arg11[%c0_30, %c0_31] : memref<32x50xf32, #tpu.memory_space<vmem>>, vector<32x50xf32>
    %cst_32 = arith.constant dense<0.000000e+00> : vector<2x50xf32>
    %34 = tpu.matmul %16, %33, %cst_32 {dimension_numbers = #tpu.dot_dimension_numbers<[1], [0], [0], [1], [0, 0, 1, 1], [], []>} : vector<2x32xf32>, vector<32x50xf32>, vector<2x50xf32> -> vector<2x50xf32>
    %c0_33 = arith.constant 0 : index
    %c0_34 = arith.constant 0 : index
    %35 = vector.load %arg12[%c0_33, %c0_34] : memref<1x50xf32, #tpu.memory_space<vmem>>, vector<1x50xf32>
    %36 = vector.broadcast %35 : vector<1x50xf32> to vector<2x50xf32>
    %37 = arith.addf %34, %36 : vector<2x50xf32>
    %cst_35 = arith.constant 0.000000e+00 : f32
    %38 = vector.broadcast %cst_35 : f32 to vector<2x50xf32>
    %39 = arith.maximumf %37, %38 : vector<2x50xf32>
    %c0_36 = arith.constant 0 : index
    %c0_37 = arith.constant 0 : index
    %40 = vector.load %arg13[%c0_36, %c0_37] : memref<32x14xf32, #tpu.memory_space<vmem>>, vector<32x14xf32>
    %cst_38 = arith.constant dense<0.000000e+00> : vector<2x14xf32>
    %41 = tpu.matmul %32, %40, %cst_38 {dimension_numbers = #tpu.dot_dimension_numbers<[1], [0], [0], [1], [0, 0, 1, 1], [], []>} : vector<2x32xf32>, vector<32x14xf32>, vector<2x14xf32> -> vector<2x14xf32>
    %c0_39 = arith.constant 0 : index
    %c0_40 = arith.constant 0 : index
    %42 = vector.load %arg14[%c0_39, %c0_40] : memref<1x14xf32, #tpu.memory_space<vmem>>, vector<1x14xf32>
    %43 = vector.broadcast %42 : vector<1x14xf32> to vector<2x14xf32>
    %44 = arith.addf %41, %43 : vector<2x14xf32>
    %cst_41 = arith.constant 0.000000e+00 : f32
    %45 = vector.broadcast %cst_41 : f32 to vector<2x14xf32>
    %46 = arith.maximumf %44, %45 : vector<2x14xf32>
    %c0_42 = arith.constant 0 : index
    %c0_43 = arith.constant 0 : index
    %47 = vector.load %arg15[%c0_42, %c0_43] : memref<50x32xf32, #tpu.memory_space<vmem>>, vector<50x32xf32>
    %cst_44 = arith.constant dense<0.000000e+00> : vector<2x32xf32>
    %48 = tpu.matmul %39, %47, %cst_44 {dimension_numbers = #tpu.dot_dimension_numbers<[1], [0], [0], [1], [0, 0, 1, 1], [], []>} : vector<2x50xf32>, vector<50x32xf32>, vector<2x32xf32> -> vector<2x32xf32>
    %c0_45 = arith.constant 0 : index
    %c0_46 = arith.constant 0 : index
    %49 = vector.load %arg16[%c0_45, %c0_46] : memref<14x32xf32, #tpu.memory_space<vmem>>, vector<14x32xf32>
    %cst_47 = arith.constant dense<0.000000e+00> : vector<2x32xf32>
    %50 = tpu.matmul %46, %49, %cst_47 {dimension_numbers = #tpu.dot_dimension_numbers<[1], [0], [0], [1], [0, 0, 1, 1], [], []>} : vector<2x14xf32>, vector<14x32xf32>, vector<2x32xf32> -> vector<2x32xf32>
    %51 = arith.addf %48, %50 : vector<2x32xf32>
    %c0_48 = arith.constant 0 : index
    %c0_49 = arith.constant 0 : index
    %52 = vector.load %arg17[%c0_48, %c0_49] : memref<1x32xf32, #tpu.memory_space<vmem>>, vector<1x32xf32>
    %53 = vector.broadcast %52 : vector<1x32xf32> to vector<2x32xf32>
    %54 = arith.addf %51, %53 : vector<2x32xf32>
    %c0_50 = arith.constant 0 : index
    %c0_51 = arith.constant 0 : index
    %55 = vector.load %arg18[%c0_50, %c0_51] : memref<32x64xf32, #tpu.memory_space<vmem>>, vector<32x64xf32>
    %cst_52 = arith.constant dense<0.000000e+00> : vector<2x64xf32>
    %56 = tpu.matmul %54, %55, %cst_52 {dimension_numbers = #tpu.dot_dimension_numbers<[1], [0], [0], [1], [0, 0, 1, 1], [], []>} : vector<2x32xf32>, vector<32x64xf32>, vector<2x64xf32> -> vector<2x64xf32>
    %c0_53 = arith.constant 0 : index
    %c0_54 = arith.constant 0 : index
    %57 = vector.load %arg19[%c0_53, %c0_54] : memref<1x64xf32, #tpu.memory_space<vmem>>, vector<1x64xf32>
    %58 = vector.broadcast %57 : vector<1x64xf32> to vector<2x64xf32>
    %59 = arith.addf %56, %58 : vector<2x64xf32>
    %cst_55 = arith.constant 0.000000e+00 : f32
    %60 = vector.broadcast %cst_55 : f32 to vector<2x64xf32>
    %61 = arith.cmpf oge, %59, %60 : vector<2x64xf32>
    %cst_56 = arith.constant 0.00999999977 : f32
    %62 = vector.broadcast %cst_56 : f32 to vector<2x64xf32>
    %63 = arith.mulf %62, %59 : vector<2x64xf32>
    %64 = arith.select %61, %59, %63 : vector<2x64xi1>, vector<2x64xf32>
    %c0_57 = arith.constant 0 : index
    %c0_58 = arith.constant 0 : index
    %65 = vector.load %arg20[%c0_57, %c0_58] : memref<2x64xf32, #tpu.memory_space<vmem>>, vector<2x64xf32>
    tpu.vector_store %arg20[%c0_57, %c0_58], %64 {strides = array<i32>} : memref<2x64xf32, #tpu.memory_space<vmem>>, vector<2x64xf32>,
    return
  }
}

</mosaic_0001>

<bundles_post_ra>
// kernel: dual_image_generator_forward.1
= control target key start
LH: loop header
LB: loop body
LE: loop exit
PB: predicated region body
PF: predicated region fallthrough
CT: control target
= control target key end

     0   :  { %vm334_vm0 = vcmask 1042432   ;;  %vm141_vm1 = vcmask 220160   ;;  %vm3144_vm2 = vmmov 0   ;;  %vm957_vm3 = vcmask 64512   ;;  %s4274_s3 = inlined_call_operand.vmem [shape: f32[27,8], index: 3, kind: input, shape index: {}]   ;;  %s4275_s0 = inlined_call_operand.vmem [shape: f32[512,27], index: 0, kind: input, shape index: {}]   ;;  %s4276_s2 = inlined_call_operand.vmem [shape: f32[2,512], index: 2, kind: input, shape index: {}]   ;;  %s4277_s4 = inlined_call_operand.vmem [shape: f32[1,8], index: 4, kind: input, shape index: {}]   ;;  %s4278_s5 = inlined_call_operand.vmem [shape: f32[8,32], index: 5, kind: input, shape index: {}]   ;;  %s4279_s7 = inlined_call_operand.vmem [shape: f32[27,8], index: 7, kind: input, shape index: {}]   ;;  %s4280_s1 = inlined_call_operand.vmem [shape: f32[512,27], index: 1, kind: input, shape index: {}]   ;;  %s4281_s8 = inlined_call_operand.vmem [shape: f32[1,8], index: 8, kind: input, shape index: {}]   ;;  %s4282_s9 = inlined_call_operand.vmem [shape: f32[8,32], index: 9, kind: input, shape index: {}]   ;;  %s4283_s15 = inlined_call_operand.vmem [shape: f32[50,32], index: 15, kind: input, shape index: {}]   ;;  %s4284_s11 = inlined_call_operand.vmem [shape: f32[32,50], index: 11, kind: input, shape index: {}]   ;;  %s4285_s6 = inlined_call_operand.vmem [shape: f32[1,32], index: 6, kind: input, shape index: {}]   ;;  %s4286_s13 = inlined_call_operand.vmem [shape: f32[32,14], index: 13, kind: input, shape index: {}]   ;;  %s4287_s10 = inlined_call_operand.vmem [shape: f32[1,32], index: 10, kind: input, shape index: {}]   ;;  %s4288_s12 = inlined_call_operand.vmem [shape: f32[1,50], index: 12, kind: input, shape index: {}]   ;;  %s4289_s16 = inlined_call_operand.vmem [shape: f32[14,32], index: 16, kind: input, shape index: {}]   ;;  %s4290_s14 = inlined_call_operand.vmem [shape: f32[1,14], index: 14, kind: input, shape index: {}]   ;;  %s4291_s18 = inlined_call_operand.vmem [shape: f32[32,64], index: 18, kind: input, shape index: {}]   ;;  %s4292_s17 = inlined_call_operand.vmem [shape: f32[1,32], index: 17, kind: input, shape index: {}]   ;;  %s4293_s19 = inlined_call_operand.vmem [shape: f32[1,64], index: 19, kind: input, shape index: {}]   ;;  %s4294_s20 = inlined_call_operand.vmem [shape: f32[2,64], index: 20, kind: output, shape index: {}]  }
   0x1   :  { %4297 = sst [smem:[#allocation2_spill]] %s4274_s3  ;;  %vm2235_vm4 = vcmask 1041408   ;;  %vm1984_vm5 = vcmask 261120   ;;  %vm2231_vm6 = vcmask 408576   ;;  %vm2157_vm7 = vcmask 1045504  }
   0x2   :  { %4298 = sst [smem:[#allocation3_spill]] %s4275_s0  ;;  %vm2153_vm8 = vcmask 113664   ;;  %vm2404_vm10 = vcmask 517120  }
   0x3   :  { %4299 = sst [smem:[#allocation4_spill]] %s4276_s2 }
   0x4   :  { %4300 = sst [smem:[#allocation5_spill]] %s4277_s4 }
   0x5   :  { %4301 = sst [smem:[#allocation6_spill]] %s4278_s5 }
   0x6   :  { %s4302_s23 = sld [smem:[#allocation2_spill]] }
   0x7   :  { %s4303_s26 = sld [smem:[#allocation3_spill]] }
   0x8   :  { %s4304_s21 = sld [smem:[#allocation4_spill]] }
   0x9   :  { %s4305_s22 = sld [smem:[#allocation5_spill]] }
   0xa   :  { %s4306_s2 = sld [smem:[#allocation6_spill]] }
   0xc   :  { %v133_v0 = vld [vmem:[%s4302_s23 + $0x18] sm:$0x7]  ;;  %v132_v1 = vld [vmem:[%s4302_s23 + $0x10] sm:$0xff]  ;;  %v131_v3 = vld [vmem:[%s4302_s23 + $0x8] sm:$0xff] }
   0xd   :  { %2863 = vmatprep.subr.msk.mxu0 %vm334_vm0, %v133_v0  ;;  %v66_v2 = vld [vmem:[%s4303_s26] sm:$0xff]  ;;  %v67_v5 = vld [vmem:[%s4303_s26 + $0x8] sm:$0xff]  ;;  %v68_v6 = vld [vmem:[%s4303_s26 + $0x10] sm:$0xff] }
   0xe   :  { %2864 = vmatpush3.msk.msra.mxu0 %vm334_vm0, %v133_v0  ;;  %2871 = vmatprep.mubr.msk.f32.mxu0 %vm141_vm1, %v66_v2  ;;  %v130_v4 = vld [vmem:[%s4302_s23] sm:$0xff]  ;;  %v69_v7 = vld [vmem:[%s4303_s26 + $0x18] sm:$0xff]  ;;  %v71_v9 = vld [vmem:[%s4303_s26 + $0x28] sm:$0xff] }
   0xf   :  { %2865 = vmatprep.subr.mxu0 %v132_v1  ;;  %v70_v8 = vld [vmem:[%s4303_s26 + $0x20] sm:$0xff]  ;;  %v72_v10 = vld [vmem:[%s4303_s26 + $0x30] sm:$0xff]  ;;  %v73_v11 = vld [vmem:[%s4303_s26 + $0x38] sm:$0xff] }
  0x10   :  { %2866 = vmatpush3.msra.mxu0 %v132_v1  ;;  %v74_v12 = vld [vmem:[%s4303_s26 + $0x40] sm:$0xff]  ;;  %v75_v13 = vld [vmem:[%s4303_s26 + $0x48] sm:$0xff]  ;;  %v76_v14 = vld [vmem:[%s4303_s26 + $0x50] sm:$0xff] }
  0x11   :  { %2867 = vmatprep.subr.mxu0 %v131_v3  ;;  %v77_v15 = vld [vmem:[%s4303_s26 + $0x58] sm:$0xff]  ;;  %v78_v16 = vld [vmem:[%s4303_s26 + $0x60] sm:$0xff]  ;;  %v79_v17 = vld [vmem:[%s4303_s26 + $0x68] sm:$0xff] }
  0x12   :  { %2868 = vmatpush3.msra.mxu0 %v131_v3  ;;  %v80_v18 = vld [vmem:[%s4303_s26 + $0x70] sm:$0xff]  ;;  %v81_v19 = vld [vmem:[%s4303_s26 + $0x78] sm:$0xff]  ;;  %v82_v20 = vld [vmem:[%s4303_s26 + $0x80] sm:$0xff] }
  0x13   :  { %2869 = vmatprep.subr.mxu0 %v130_v4  ;;  %v83_v21 = vld [vmem:[%s4303_s26 + $0x88] sm:$0xff]  ;;  %v84_v22 = vld [vmem:[%s4303_s26 + $0x90] sm:$0xff]  ;;  %v85_v23 = vld [vmem:[%s4303_s26 + $0x98] sm:$0xff] }
  0x14   :  { %2870 = vmatpush3.msra.mxu0 %v130_v4  ;;  %v86_v24 = vld [vmem:[%s4303_s26 + $0xa0] sm:$0xff]  ;;  %v87_v25 = vld [vmem:[%s4303_s26 + $0xa8] sm:$0xff]  ;;  %v88_v26 = vld [vmem:[%s4303_s26 + $0xb0] sm:$0xff]  ;;  %v3142_v4 = vmov 1983009808  }
  0x15   :  { %2872 = vmatmul.mubr.msk.f32.vlgmr.msra.gmra.mxu0 %vm141_vm1, %v67_v5  ;;  %v89_v27 = vld [vmem:[%s4303_s26 + $0xb8] sm:$0xff]  ;;  %v90_v28 = vld [vmem:[%s4303_s26 + $0xc0] sm:$0xff]  ;;  %v91_v29 = vld [vmem:[%s4303_s26 + $0xc8] sm:$0xff]  ;;  %v790_v5 = vunpack.c.l.s4 %v3142_v4 }
  0x16   :  { %2874 = vmatprep.mubr.msk.f32.mxu0 %vm141_vm1, %v68_v6  ;;  %v92_v30 = vld [vmem:[%s4303_s26 + $0xd0] sm:$0xff]  ;;  %v93_v31 = vld [vmem:[%s4303_s26 + $0xd8] sm:$0xff]  ;;  %v94_v32 = vld [vmem:[%s4303_s26 + $0xe0] sm:$0xff]  ;;  %v792_v6 = vlaneseq }
  0x17   :  { %v95_v33 = vld [vmem:[%s4303_s26 + $0xe8] sm:$0xff]  ;;  %v96_v34 = vld [vmem:[%s4303_s26 + $0xf0] sm:$0xff]  ;;  %v97_v35 = vld [vmem:[%s4303_s26 + $0xf8] sm:$0xff] }
  0x18   :  { %v98_v36 = vld [vmem:[%s4303_s26 + $0x100] sm:$0xff]  ;;  %v99_v37 = vld [vmem:[%s4303_s26 + $0x108] sm:$0xff]  ;;  %v100_v38 = vld [vmem:[%s4303_s26 + $0x110] sm:$0xff] }
  0x19   :  { %2875 = vmatmul.mubr.msk.f32.gmra.mxu0 %vm141_vm1, %v69_v7  ;;  %v101_v39 = vld [vmem:[%s4303_s26 + $0x118] sm:$0xff]  ;;  %v102_v40 = vld [vmem:[%s4303_s26 + $0x120] sm:$0xff]  ;;  %v103_v41 = vld [vmem:[%s4303_s26 + $0x128] sm:$0xff]  ;;  %v791_v7 = vunpack.c.0.s8 %v790_v5 }
  0x1a   :  { %2877 = vmatprep.mubr.msk.f32.mxu0 %vm141_vm1, %v70_v8  ;;  %v104_v42 = vld [vmem:[%s4303_s26 + $0x130] sm:$0xff]  ;;  %v105_v43 = vld [vmem:[%s4303_s26 + $0x138] sm:$0xff]  ;;  %v106_v44 = vld [vmem:[%s4303_s26 + $0x140] sm:$0xff]  ;;  %v793_v8 = vshrl.u32 %v792_v6, 7 }
  0x1b   :  { %v107_v45 = vld [vmem:[%s4303_s26 + $0x148] sm:$0xff]  ;;  %v108_v46 = vld [vmem:[%s4303_s26 + $0x150] sm:$0xff]  ;;  %v109_v47 = vld [vmem:[%s4303_s26 + $0x158] sm:$0xff] }
  0x1c   :  { %v110_v48 = vld [vmem:[%s4303_s26 + $0x160] sm:$0xff]  ;;  %v111_v49 = vld [vmem:[%s4303_s26 + $0x168] sm:$0xff]  ;;  %v112_v50 = vld [vmem:[%s4303_s26 + $0x170] sm:$0xff] }
  0x1d   :  { %2878 = vmatmul.mubr.msk.f32.gmra.mxu0 %vm141_vm1, %v71_v9  ;;  %v113_v51 = vld [vmem:[%s4303_s26 + $0x178] sm:$0xff]  ;;  %v114_v52 = vld [vmem:[%s4303_s26 + $0x180] sm:$0xff]  ;;  %v115_v53 = vld [vmem:[%s4303_s26 + $0x188] sm:$0xff]  ;;  %v794_v9 = vsub.s32 %v791_v7, %v793_v8 }
  0x1e   :  { %2880 = vmatprep.mubr.msk.f32.mxu0 %vm141_vm1, %v72_v10  ;;  %v116_v54 = vld [vmem:[%s4303_s26 + $0x190] sm:$0xff]  ;;  %v117_v55 = vld [vmem:[%s4303_s26 + $0x198] sm:$0xff]  ;;  %v118_v56 = vld [vmem:[%s4303_s26 + $0x1a0] sm:$0xff] }
  0x1f   :  { %v119_v57 = vld [vmem:[%s4303_s26 + $0x1a8] sm:$0xff]  ;;  %v120_v58 = vld [vmem:[%s4303_s26 + $0x1b0] sm:$0xff]  ;;  %v121_v59 = vld [vmem:[%s4303_s26 + $0x1b8] sm:$0xff] }
  0x20   :  { %v122_v60 = vld [vmem:[%s4303_s26 + $0x1c0] sm:$0xff]  ;;  %v123_v61 = vld [vmem:[%s4303_s26 + $0x1c8] sm:$0xff]  ;;  %v124_v62 = vld [vmem:[%s4303_s26 + $0x1d0] sm:$0xff] }
  0x21   :  { %2881 = vmatmul.mubr.msk.f32.gmra.mxu0 %vm141_vm1, %v73_v11  ;;  %v125_v63 = vld [vmem:[%s4303_s26 + $0x1d8] sm:$0xff]  ;;  %v126_v0 = vld [vmem:[%s4303_s26 + $0x1e0] sm:$0xff]  ;;  %v127_v1 = vld [vmem:[%s4303_s26 + $0x1e8] sm:$0xff] }
  0x22   :  { %2883 = vmatprep.mubr.msk.f32.mxu0 %vm141_vm1, %v74_v12  ;;  %v128_v2 = vld [vmem:[%s4303_s26 + $0x1f0] sm:$0xff]  ;;  %v129_v3 = vld [vmem:[%s4303_s26 + $0x1f8] sm:$0xff]  ;;  %v65_v10 = vld [vmem:[%s4304_s21] sm:$0xff] }
  0x23   :  { %v3523_v11 = vrot.slane %v65_v10, %v794_v9 }
  0x25   :  { %2884 = vmatmul.mubr.msk.f32.gmra.mxu0 %vm141_vm1, %v75_v13  ;;  %v803_v12 = vcombine.high %v3523_v11, %v3523_v11 }
  0x26   :  { %2886 = vmatprep.mubr.msk.f32.mxu0 %vm141_vm1, %v76_v14 }
  0x27   :  { %873 = vmatprep.mubr.f32.mxu1 %v803_v12 }
  0x29   :  { %2887 = vmatmul.mubr.msk.f32.gmra.mxu0 %vm141_vm1, %v77_v15 }
  0x2a   :  { %2889 = vmatprep.mubr.msk.f32.mxu0 %vm141_vm1, %v78_v16 }
  0x2d   :  { %2890 = vmatmul.mubr.msk.f32.gmra.mxu0 %vm141_vm1, %v79_v17 }
  0x2e   :  { %2892 = vmatprep.mubr.msk.f32.mxu0 %vm141_vm1, %v80_v18 }
  0x31   :  { %2893 = vmatmul.mubr.msk.f32.gmra.mxu0 %vm141_vm1, %v81_v19 }
  0x32   :  { %2895 = vmatprep.mubr.msk.f32.mxu0 %vm141_vm1, %v82_v20 }
  0x35   :  { %2896 = vmatmul.mubr.msk.f32.gmra.mxu0 %vm141_vm1, %v83_v21 }
  0x36   :  { %2898 = vmatprep.mubr.msk.f32.mxu0 %vm141_vm1, %v84_v22 }
  0x39   :  { %2899 = vmatmul.mubr.msk.f32.gmra.mxu0 %vm141_vm1, %v85_v23 }
  0x3a   :  { %2901 = vmatprep.mubr.msk.f32.mxu0 %vm141_vm1, %v86_v24 }
  0x3d   :  { %2902 = vmatmul.mubr.msk.f32.gmra.mxu0 %vm141_vm1, %v87_v25 }
  0x3e   :  { %2904 = vmatprep.mubr.msk.f32.mxu0 %vm141_vm1, %v88_v26  ;;  %v788_v26 = vcombine.high %v65_v10, %v65_v10 }
  0x41   :  { %2905 = vmatmul.mubr.msk.f32.gmra.mxu0 %vm141_vm1, %v89_v27 }
  0x42   :  { %2907 = vmatprep.mubr.msk.f32.mxu0 %vm141_vm1, %v90_v28 }
  0x45   :  { %2908 = vmatmul.mubr.msk.f32.gmra.mxu0 %vm141_vm1, %v91_v29  ;;  %v3545_v29 = vrot.slane %v788_v26, %v794_v9 }
  0x46   :  { %2910 = vmatprep.mubr.msk.f32.mxu0 %vm141_vm1, %v92_v30 }
  0x49   :  { %2911 = vmatmul.mubr.msk.f32.gmra.mxu0 %vm141_vm1, %v93_v31 }
  0x4a   :  { %2913 = vmatprep.mubr.msk.f32.mxu0 %vm141_vm1, %v94_v32 }
  0x4d   :  { %2914 = vmatmul.mubr.msk.f32.gmra.mxu0 %vm141_vm1, %v95_v33 }
  0x4e   :  { %2916 = vmatprep.mubr.msk.f32.mxu0 %vm141_vm1, %v96_v34 }
  0x51   :  { %2917 = vmatmul.mubr.msk.f32.gmra.mxu0 %vm141_vm1, %v97_v35 }
  0x52   :  { %2919 = vmatprep.mubr.msk.f32.mxu0 %vm141_vm1, %v98_v36 }
  0x55   :  { %2920 = vmatmul.mubr.msk.f32.gmra.mxu0 %vm141_vm1, %v99_v37 }
  0x56   :  { %2922 = vmatprep.mubr.msk.f32.mxu0 %vm141_vm1, %v100_v38 }
  0x59   :  { %2923 = vmatmul.mubr.msk.f32.gmra.mxu0 %vm141_vm1, %v101_v39 }
  0x5a   :  { %2925 = vmatprep.mubr.msk.f32.mxu0 %vm141_vm1, %v102_v40 }
  0x5d   :  { %2926 = vmatmul.mubr.msk.f32.gmra.mxu0 %vm141_vm1, %v103_v41 }
  0x5e   :  { %2928 = vmatprep.mubr.msk.f32.mxu0 %vm141_vm1, %v104_v42 }
  0x61   :  { %2929 = vmatmul.mubr.msk.f32.gmra.mxu0 %vm141_vm1, %v105_v43 }
  0x62   :  { %2931 = vmatprep.mubr.msk.f32.mxu0 %vm141_vm1, %v106_v44 }
  0x65   :  { %2932 = vmatmul.mubr.msk.f32.gmra.mxu0 %vm141_vm1, %v107_v45  ;;  %v3562_v45 = vld [vmem:[%s4305_s22] ss:$0 sm:$0xff] }
  0x66   :  { %2934 = vmatprep.mubr.msk.f32.mxu0 %vm141_vm1, %v108_v46 }
  0x69   :  { %2935 = vmatmul.mubr.msk.f32.gmra.mxu0 %vm141_vm1, %v109_v47 }
  0x6a   :  { %2937 = vmatprep.mubr.msk.f32.mxu0 %vm141_vm1, %v110_v48 }
  0x6d   :  { %2938 = vmatmul.mubr.msk.f32.gmra.mxu0 %vm141_vm1, %v111_v49 }
  0x6e   :  { %2940 = vmatprep.mubr.msk.f32.mxu0 %vm141_vm1, %v112_v50 }
  0x71   :  { %2941 = vmatmul.mubr.msk.f32.gmra.mxu0 %vm141_vm1, %v113_v51 }
  0x72   :  { %2943 = vmatprep.mubr.msk.f32.mxu0 %vm141_vm1, %v114_v52 }
  0x75   :  { %2944 = vmatmul.mubr.msk.f32.gmra.mxu0 %vm141_vm1, %v115_v53 }
  0x76   :  { %2946 = vmatprep.mubr.msk.f32.mxu0 %vm141_vm1, %v116_v54 }
  0x79   :  { %2947 = vmatmul.mubr.msk.f32.gmra.mxu0 %vm141_vm1, %v117_v55 }
  0x7a   :  { %2949 = vmatprep.mubr.msk.f32.mxu0 %vm141_vm1, %v118_v56 }
  0x7d   :  { %2950 = vmatmul.mubr.msk.f32.gmra.mxu0 %vm141_vm1, %v119_v57 }
  0x7e   :  { %2952 = vmatprep.mubr.msk.f32.mxu0 %vm141_vm1, %v120_v58 }
  0x81   :  { %2953 = vmatmul.mubr.msk.f32.gmra.mxu0 %vm141_vm1, %v121_v59 }
  0x82   :  { %2955 = vmatprep.mubr.msk.f32.mxu0 %vm141_vm1, %v122_v60 }
  0x85   :  { %2956 = vmatmul.mubr.msk.f32.gmra.mxu0 %vm141_vm1, %v123_v61 }
  0x86   :  { %2958 = vmatprep.mubr.msk.f32.mxu0 %vm141_vm1, %v124_v62 }
  0x89   :  { %2959 = vmatmul.mubr.msk.f32.gmra.mxu0 %vm141_vm1, %v125_v63 }
  0x8a   :  { %2961 = vmatprep.mubr.msk.f32.mxu0 %vm141_vm1, %v126_v0 }
  0x8d   :  { %2962 = vmatmul.mubr.msk.f32.gmra.mxu0 %vm141_vm1, %v127_v1 }
  0x8e   :  { %2964 = vmatprep.mubr.msk.f32.mxu0 %vm141_vm1, %v128_v2 }
  0x91   :  { %2965 = vmatmul.mubr.msk.f32.gmra.mxu0 %vm141_vm1, %v129_v3 }
  0x92   :  { %1815 = vmatprep.mubr.f32.mxu0 %v803_v12 }
  0xd5   :  { %v3527_v13 = vpop.f32.mrf.mxu0 }
  0xd7   :  { %v3529_v14 = vpop.f32.mrf.mxu0 }
  0xd9   :  { %v3531_v15 = vpop.f32.mrf.mxu0 }
  0xdb   :  { %v3533_v16 = vpop.f32.mrf.mxu0 }
  0xdd   :  { %v3535_v17 = vpop.f32.mrf.mxu0 }
  0xdf   :  { %v3537_v18 = vpop.f32.mrf.mxu0 }
  0xe1   :  { %v3539_v19 = vpop.f32.mrf.mxu0 }
  0xe3   :  { %v3541_v20 = vpop.f32.mrf.mxu0 }
  0xe5   :  { %v2885_v21 = vpop.f32.mrf.mxu0 }
  0xe6   :  { %v450_v10 = vadd.f32 %v2885_v21, %v3562_v45  ;;  %v440_v21 = vadd.f32 %v3539_v19, %v3562_v45  ;;  %v430_v19 = vadd.f32 %v3535_v17, %v3562_v45 }
  0xe7   :  { %v3543_v22 = vpop.f32.mrf.mxu0 }
  0xe9   :  { %v2888_v23 = vpop.f32.mrf.mxu0 }
  0xea   :  { %v460_v0 = vadd.f32 %v2888_v23, %v3562_v45 }
  0xeb   :  { %v454_v24 = vpop.f32.mrf.mxu0 }
  0xec   :  { %v455_v5 = vadd.f32 %v3562_v45, %v454_v24  ;;  %v734_v12 = vmax.f32 %v460_v0, 0.0  ;;  %v445_v24 = vadd.f32 %v3562_v45, %v3543_v22  ;;  %v435_v22 = vadd.f32 %v3562_v45, %v3541_v20 }
  0xed   :  { %v2891_v25 = vpop.f32.mrf.mxu0 }
  0xee   :  { %v470_v54 = vadd.f32 %v2891_v25, %v3562_v45 }
  0xef   :  { %v464_v27 = vpop.f32.mrf.mxu0 }
  0xf0   :  { %v465_v59 = vadd.f32 %v3562_v45, %v464_v27  ;;  %v736_v1 = vmax.f32 %v470_v54, 0.0  ;;  %v733_v27 = vmax.f32 %v455_v5, 0.0  ;;  %v728_v54 = vmax.f32 %v430_v19, 0.0 }
  0xf1   :  { %v2894_v28 = vpop.f32.mrf.mxu0 }
  0xf2   :  { %v480_v46 = vadd.f32 %v2894_v28, %v3562_v45  ;;  %v735_v6 = vmax.f32 %v465_v59, 0.0 }
  0xf3   :  { %v474_v30 = vpop.f32.mrf.mxu0 }
  0xf4   :  { %v475_v49 = vadd.f32 %v3562_v45, %v474_v30  ;;  %v738_v55 = vmax.f32 %v480_v46, 0.0 }
  0xf5   :  { %v3547_v31 = vpop.f32.mrf.mxu0 }
  0xf6   :  { %v737_v60 = vmax.f32 %v475_v49, 0.0 }
  0xf7   :  { %v3549_v32 = vpop.f32.mrf.mxu0 }
  0xf9   :  { %v3551_v33 = vpop.f32.mrf.mxu0 }
  0xfb   :  { %v3553_v34 = vpop.f32.mrf.mxu0 }
  0xfd   :  { %v3555_v35 = vpop.f32.mrf.mxu0 }
  0xff   :  { %v3557_v36 = vpop.f32.mrf.mxu0 }
 0x101   :  { %v2906_v37 = vpop.f32.mrf.mxu0 }
 0x102   :  { %v520_v30 = vadd.f32 %v2906_v37, %v3562_v45  ;;  %v510_v37 = vadd.f32 %v3555_v35, %v3562_v45  ;;  %v500_v35 = vadd.f32 %v3551_v33, %v3562_v45  ;;  %v490_v33 = vadd.f32 %v3547_v31, %v3562_v45 }
 0x103   :  { %v514_v38 = vpop.f32.mrf.mxu0 }
 0x104   :  { %v744_v17 = vmax.f32 %v510_v37, 0.0  ;;  %v740_v31 = vmax.f32 %v490_v33, 0.0 }
 0x105   :  { %v2909_v39 = vpop.f32.mrf.mxu0 }
 0x106   :  { %v530_v8 = vadd.f32 %v2909_v39, %v3562_v45 }
 0x107   :  { %v524_v40 = vpop.f32.mrf.mxu0 }
 0x108   :  { %v525_v25 = vadd.f32 %v3562_v45, %v524_v40  ;;  %v748_v39 = vmax.f32 %v530_v8, 0.0  ;;  %v515_v40 = vadd.f32 %v3562_v45, %v514_v38  ;;  %v505_v38 = vadd.f32 %v3562_v45, %v3557_v36 }
 0x109   :  { %v2912_v41 = vpop.f32.mrf.mxu0  ;;  %v495_v36 = vadd.f32 %v3562_v45, %v3553_v34  ;;  %v485_v34 = vadd.f32 %v3562_v45, %v3549_v32  ;;  %v3637_v32 = vcombine.high %v3545_v29, %v3545_v29 }
 0x10a   :  { %v540_v62 = vadd.f32 %v2912_v41, %v3562_v45  ;;  %v732_v41 = vmax.f32 %v450_v10, 0.0  ;;  %v745_v20 = vmax.f32 %v515_v40, 0.0 }
 0x10b   :  { %v534_v42 = vpop.f32.mrf.mxu0  ;;  %v741_v0 = vmax.f32 %v495_v36, 0.0 }
 0x10c   :  { %v535_v3 = vadd.f32 %v3562_v45, %v534_v42  ;;  %v750_v9 = vmax.f32 %v540_v62, 0.0 }
 0x10d   :  { %v2915_v43 = vpop.f32.mrf.mxu0 }
 0x10e   :  { %v550_v51 = vadd.f32 %v2915_v43, %v3562_v45  ;;  %v749_v26 = vmax.f32 %v535_v3, 0.0  ;;  %v747_v43 = vmax.f32 %v525_v25, 0.0 }
 0x10f   :  { %v544_v44 = vpop.f32.mrf.mxu0 }
 0x110   :  { %v545_v57 = vadd.f32 %v3562_v45, %v544_v44  ;;  %v752_v63 = vmax.f32 %v550_v51, 0.0  ;;  %v731_v44 = vmax.f32 %v445_v24, 0.0  ;;  %v729_v51 = vmax.f32 %v435_v22, 0.0 }
 0x111   :  { %v2918_v47 = vpop.f32.mrf.mxu0 }
 0x112   :  { %v560_v48 = vadd.f32 %v2918_v47, %v3562_v45  ;;  %v751_v4 = vmax.f32 %v545_v57, 0.0  ;;  %v746_v47 = vmax.f32 %v520_v30, 0.0  ;;  %v415_v57 = vadd.f32 %v3562_v45, %v3533_v16 }
 0x113   :  { %v554_v50 = vpop.f32.mrf.mxu0  ;;  %v405_v16 = vadd.f32 %v3562_v45, %v3529_v14 }
 0x114   :  { %v555_v52 = vadd.f32 %v3562_v45, %v554_v50  ;;  %v754_v53 = vmax.f32 %v560_v48, 0.0  ;;  %v730_v48 = vmax.f32 %v440_v21, 0.0  ;;  %v425_v50 = vadd.f32 %v3562_v45, %v3537_v18 }
 0x115   :  { %v3570_v56 = vpop.f32.mrf.mxu0  ;;  %v743_v18 = vmax.f32 %v505_v38, 0.0 }
 0x116   :  { %v753_v58 = vmax.f32 %v555_v52, 0.0  ;;  %2625 = vmatprep.subr.mxu1 %v754_v53  ;;  %v420_v53 = vadd.f32 %v3531_v15, %v3562_v45  ;;  %v742_v15 = vmax.f32 %v500_v35, 0.0 }
 0x117   :  { %v3574_v61 = vpop.f32.mrf.mxu0  ;;  %2626 = vmatpush3.msra.mxu1 %v738_v55 }
 0x118   :  { %2627 = vmatprep.subr.mxu1 %v753_v58  ;;  %v727_v58 = vmax.f32 %v425_v50, 0.0  ;;  %v726_v62 = vmax.f32 %v420_v53, 0.0 }
 0x119   :  { %v3578_v2 = vpop.f32.mrf.mxu0  ;;  %2628 = vmatpush3.msra.mxu1 %v737_v60  ;;  %v410_v60 = vadd.f32 %v3527_v13, %v3562_v45  ;;  %v739_v13 = vmax.f32 %v485_v34, 0.0 }
 0x11a   :  { %2629 = vmatprep.subr.mxu1 %v752_v63 }
 0x11b   :  { %v3582_v7 = vpop.f32.mrf.mxu0  ;;  %2630 = vmatpush3.msra.mxu1 %v736_v1  ;;  %v725_v1 = vmax.f32 %v415_v57, 0.0 }
 0x11c   :  { %2631 = vmatprep.subr.mxu1 %v751_v4  ;;  %v724_v4 = vmax.f32 %v410_v60, 0.0 }
 0x11d   :  { %v3586_v23 = vpop.f32.mrf.mxu0  ;;  %2632 = vmatpush3.msra.mxu1 %v735_v6  ;;  %v723_v6 = vmax.f32 %v405_v16, 0.0 }
 0x11e   :  { %2633 = vmatprep.subr.mxu1 %v750_v9 }
 0x11f   :  { %v3591_v28 = vpop.f32.mrf.mxu0  ;;  %2634 = vmatpush3.msra.mxu1 %v734_v12 }
 0x120   :  { %2635 = vmatprep.subr.mxu1 %v749_v26 }
 0x121   :  { %v3596_v42 = vpop.f32.mrf.mxu0  ;;  %2636 = vmatpush3.msra.mxu1 %v733_v27 }
 0x122   :  { %2637 = vmatprep.subr.mxu1 %v748_v39 }
 0x123   :  { %v3601_v46 = vpop.f32.mrf.mxu0  ;;  %2638 = vmatpush3.msra.mxu1 %v732_v41 }
 0x124   :  { %2639 = vmatprep.subr.mxu1 %v747_v43 }
 0x125   :  { %v3607_v49 = vpop.f32.mrf.mxu0  ;;  %2640 = vmatpush3.msra.mxu1 %v731_v44 }
 0x126   :  { %2641 = vmatprep.subr.mxu1 %v746_v47 }
 0x127   :  { %v3613_v52 = vpop.f32.mrf.mxu0  ;;  %2642 = vmatpush3.msra.mxu1 %v730_v48 }
 0x128   :  { %2643 = vmatprep.subr.mxu1 %v745_v20 }
 0x129   :  { %v3619_v55 = vpop.f32.mrf.mxu0  ;;  %2644 = vmatpush3.msra.mxu1 %v729_v51 }
 0x12a   :  { %2645 = vmatprep.subr.mxu1 %v744_v17  ;;  %v620_v57 = vadd.f32 %v3619_v55, %v3562_v45 }
 0x12b   :  { %v3625_v59 = vpop.f32.mrf.mxu0  ;;  %2646 = vmatpush3.msra.mxu1 %v728_v54 }
 0x12c   :  { %2647 = vmatprep.subr.mxu1 %v743_v18  ;;  %v615_v60 = vadd.f32 %v3562_v45, %v3625_v59  ;;  %v766_v16 = vmax.f32 %v620_v57, 0.0  ;;  %v1098_v57 = vld [vmem:[%s4279_s7 + $0x10] sm:$0xff] }
 0x12d   :  { %v2939_v63 = vpop.f32.mrf.mxu0  ;;  %2648 = vmatpush3.msra.mxu1 %v727_v58 }
 0x12e   :  { %2649 = vmatprep.subr.mxu1 %v742_v15  ;;  %v630_v50 = vadd.f32 %v2939_v63, %v3562_v45 }
 0x12f   :  { %v624_v3 = vpop.f32.mrf.mxu0  ;;  %2650 = vmatpush3.msra.mxu1 %v726_v62 }
 0x130   :  { %2651 = vmatprep.subr.mxu1 %v741_v0  ;;  %v625_v53 = vadd.f32 %v3562_v45, %v624_v3  ;;  %v768_v58 = vmax.f32 %v630_v50, 0.0  ;;  %v610_v0 = vadd.f32 %v3607_v49, %v3562_v45  ;;  %v605_v3 = vadd.f32 %v3562_v45, %v3613_v52 }
 0x131   :  { %v2942_v5 = vpop.f32.mrf.mxu0  ;;  %2652 = vmatpush3.msra.mxu1 %v725_v1 }
 0x132   :  { %2653 = vmatprep.subr.mxu1 %v740_v31  ;;  %v640_v22 = vadd.f32 %v2942_v5, %v3562_v45  ;;  %v767_v62 = vmax.f32 %v625_v53, 0.0  ;;  %v765_v31 = vmax.f32 %v615_v60, 0.0  ;;  %v600_v5 = vadd.f32 %v3596_v42, %v3562_v45  ;;  %v1034_v60 = vld [vmem:[%s4280_s1 + $0x10] sm:$0xff] }
 0x133   :  { %v634_v8 = vpop.f32.mrf.mxu0  ;;  %2654 = vmatpush3.msra.mxu1 %v724_v4 }
 0x134   :  { %2655 = vmatprep.subr.mxu1 %v739_v13  ;;  %v635_v47 = vadd.f32 %v3562_v45, %v634_v8  ;;  %v770_v51 = vmax.f32 %v640_v22, 0.0  ;;  %v764_v13 = vmax.f32 %v610_v0, 0.0  ;;  %v595_v8 = vadd.f32 %v3562_v45, %v3601_v46  ;;  %v1038_v0 = vld [vmem:[%s4280_s1 + $0x30] sm:$0xff] }
 0x135   :  { %v3639_v9 = vpop.f32.mrf.mxu0  ;;  %2656 = vmatpush3.msra.mxu1 %v723_v6 }
 0x136   :  { %874 = vmatmul.mubr.f32.vlgmr.msra.gmra.mxu1 %v3523_v11  ;;  %v769_v54 = vmax.f32 %v635_v47, 0.0  ;;  %v761_v46 = vmax.f32 %v595_v8, 0.0  ;;  %v1050_v8 = vld [vmem:[%s4280_s1 + $0x90] sm:$0xff] }
 0x137   :  { %v3642_v14 = vpop.f32.mrf.mxu0  ;;  %943 = vmatprep.mubr.f32.mxu1 %v3637_v32 }
 0x139   :  { %v3645_v10 = vpop.f32.mrf.mxu0 }
 0x13b   :  { %v3647_v12 = vpop.f32.mrf.mxu0 }
 0x13d   :  { %v2951_v25 = vpop.f32.mrf.mxu0 }
 0x13e   :  { %v670_v52 = vadd.f32 %v2951_v25, %v3562_v45  ;;  %v660_v25 = vadd.f32 %v3645_v10, %v3562_v45  ;;  %v650_v10 = vadd.f32 %v3639_v9, %v3562_v45 }
 0x13f   :  { %v3649_v26 = vpop.f32.mrf.mxu0 }
 0x140   :  { %v665_v42 = vadd.f32 %v3562_v45, %v3649_v26  ;;  %v655_v26 = vadd.f32 %v3562_v45, %v3647_v12  ;;  %v645_v12 = vadd.f32 %v3562_v45, %v3642_v14 }
 0x141   :  { %v2954_v24 = vpop.f32.mrf.mxu0 }
 0x142   :  { %v680_v59 = vadd.f32 %v2954_v24, %v3562_v45  ;;  %v590_v24 = vadd.f32 %v3586_v23, %v3562_v45  ;;  %v580_v23 = vadd.f32 %v3578_v2, %v3562_v45  ;;  %v775_v22 = vmax.f32 %v665_v42, 0.0  ;;  %v1056_v42 = vld [vmem:[%s4280_s1 + $0xc0] sm:$0xff] }
 0x143   :  { %v674_v27 = vpop.f32.mrf.mxu0  ;;  %v570_v2 = vadd.f32 %v3570_v56, %v3562_v45  ;;  %v3143_v56 = vmov 0.0  }
 0x144   :  { %v675_v49 = vadd.f32 %v3562_v45, %v674_v27  ;;  %v758_v47 = vmax.f32 %v580_v23, 0.0  ;;  %v1062_v23 = vld [vmem:[%s4280_s1 + $0xf0] sm:$0xff] }
 0x145   :  { %v2957_v30 = vpop.f32.mrf.mxu0  ;;  %v756_v9 = vmax.f32 %v570_v2, 0.0  ;;  %v1070_v2 = vld [vmem:[%s4280_s1 + $0x130] sm:$0xff] }
 0x146   :  { %v690_v63 = vadd.f32 %v2957_v30, %v3562_v45  ;;  %v763_v30 = vmax.f32 %v605_v3, 0.0  ;;  %v777_v27 = vmax.f32 %v675_v49, 0.0  ;;  %v1042_v3 = vld [vmem:[%s4280_s1 + $0x50] sm:$0xff]  ;;  %v1048_v49 = vld [vmem:[%s4280_s1 + $0x80] sm:$0xff] }
 0x147   :  { %v684_v39 = vpop.f32.mrf.mxu0 }
 0x148   :  { %v685_v55 = vadd.f32 %v3562_v45, %v684_v39  ;;  %v780_v4 = vmax.f32 %v690_v63, 0.0  ;;  %v778_v39 = vmax.f32 %v680_v59, 0.0  ;;  %v1036_v63 = vld [vmem:[%s4280_s1 + $0x20] sm:$0xff] }
 0x149   :  { %v2960_v21 = vpop.f32.mrf.mxu0  ;;  %v1044_v59 = vld [vmem:[%s4280_s1 + $0x60] sm:$0xff] }
 0x14a   :  { %v700_v36 = vadd.f32 %v2960_v21, %v3562_v45  ;;  %v779_v6 = vmax.f32 %v685_v55, 0.0  ;;  %v762_v21 = vmax.f32 %v600_v5, 0.0  ;;  %v1040_v55 = vld [vmem:[%s4280_s1 + $0x40] sm:$0xff]  ;;  %v1046_v5 = vld [vmem:[%s4280_s1 + $0x70] sm:$0xff] }
 0x14b   :  { %v694_v41 = vpop.f32.mrf.mxu0 }
 0x14c   :  { %v695_v33 = vadd.f32 %v3562_v45, %v694_v41  ;;  %v782_v34 = vmax.f32 %v700_v36, 0.0  ;;  %v585_v41 = vadd.f32 %v3562_v45, %v3591_v28  ;;  %v575_v28 = vadd.f32 %v3562_v45, %v3582_v7 }
 0x14d   :  { %v2963_v40 = vpop.f32.mrf.mxu0  ;;  %v565_v7 = vadd.f32 %v3562_v45, %v3574_v61  ;;  %v1099_v61 = vld [vmem:[%s4279_s7 + $0x18] sm:$0x7] }
 0x14e   :  { %v710_v48 = vadd.f32 %v2963_v40, %v3562_v45  ;;  %v781_v1 = vmax.f32 %v695_v33, 0.0  ;;  %v776_v40 = vmax.f32 %v670_v52, 0.0  ;;  %v1096_v33 = vld [vmem:[%s4279_s7] sm:$0xff] }
 0x14f   :  { %v704_v43 = vpop.f32.mrf.mxu0  ;;  %v755_v50 = vmax.f32 %v565_v7, 0.0  ;;  %v1052_v52 = vld [vmem:[%s4280_s1 + $0xa0] sm:$0xff]  ;;  %v1074_v7 = vld [vmem:[%s4280_s1 + $0x150] sm:$0xff] }
 0x150   :  { %v705_v35 = vadd.f32 %v3562_v45, %v704_v43  ;;  %v784_v18 = vmax.f32 %v710_v48, 0.0  ;;  %v760_v43 = vmax.f32 %v590_v24, 0.0  ;;  %v757_v48 = vmax.f32 %v575_v28, 0.0  ;;  %v1054_v24 = vld [vmem:[%s4280_s1 + $0xb0] sm:$0xff] }
 0x151   :  { %v2966_v44 = vpop.f32.mrf.mxu0  ;;  %v1066_v28 = vld [vmem:[%s4280_s1 + $0x110] sm:$0xff] }
 0x152   :  { %v720_v37 = vadd.f32 %v2966_v44, %v3562_v45  ;;  %v783_v15 = vmax.f32 %v705_v35, 0.0  ;;  %v759_v44 = vmax.f32 %v585_v41, 0.0  ;;  %v1058_v41 = vld [vmem:[%s4280_s1 + $0xd0] sm:$0xff] }
 0x153   :  { %v714_v19 = vpop.f32.mrf.mxu0 }
 0x154   :  { %v786_v38 = vmax.f32 %v720_v37, 0.0  ;;  %v715_v20 = vadd.f32 %v3562_v45, %v714_v19  ;;  %v774_v37 = vmax.f32 %v660_v25, 0.0  ;;  %v773_v19 = vmax.f32 %v655_v26, 0.0  ;;  %v949_v45 = vld [vmem:[%s4306_s2] sm:$0xff] }
 0x155   :  { %v1060_v25 = vld [vmem:[%s4280_s1 + $0xe0] sm:$0xff] }
 0x156   :  { %v785_v17 = vmax.f32 %v715_v20, 0.0  ;;  %2660 = vmatprep.subr.mxu1 %v786_v38  ;;  %v772_v38 = vmax.f32 %v650_v10, 0.0  ;;  %v771_v20 = vmax.f32 %v645_v12, 0.0  ;;  %v1064_v26 = vld [vmem:[%s4280_s1 + $0x100] sm:$0xff] }
 0x157   :  { %2661 = vmatpush3.msra.mxu1 %v770_v51  ;;  %v1068_v10 = vld [vmem:[%s4280_s1 + $0x120] sm:$0xff] }
 0x158   :  { %2662 = vmatprep.subr.mxu1 %v785_v17  ;;  %v1072_v12 = vld [vmem:[%s4280_s1 + $0x140] sm:$0xff] }
 0x159   :  { %2663 = vmatpush3.msra.mxu1 %v769_v54 }
 0x15a   :  { %2664 = vmatprep.subr.mxu1 %v784_v18  ;;  %v1032_v18 = vld [vmem:[%s4280_s1] sm:$0xff] }
 0x15b   :  { %2665 = vmatpush3.msra.mxu1 %v768_v58  ;;  %v1097_v58 = vld [vmem:[%s4279_s7 + $0x8] sm:$0xff] }
 0x15c   :  { %2666 = vmatprep.subr.mxu1 %v783_v15  ;;  %v1033_v15 = vld [vmem:[%s4280_s1 + $0x8] sm:$0xff] }
 0x15d   :  { %2667 = vmatpush3.msra.mxu1 %v767_v62  ;;  %v1035_v62 = vld [vmem:[%s4280_s1 + $0x18] sm:$0xff] }
 0x15e   :  { %2668 = vmatprep.subr.mxu1 %v782_v34  ;;  %v1037_v34 = vld [vmem:[%s4280_s1 + $0x28] sm:$0xff] }
 0x15f   :  { %2669 = vmatpush3.msra.mxu1 %v766_v16  ;;  %v1039_v16 = vld [vmem:[%s4280_s1 + $0x38] sm:$0xff] }
 0x160   :  { %2670 = vmatprep.subr.mxu1 %v781_v1  ;;  %v1041_v1 = vld [vmem:[%s4280_s1 + $0x48] sm:$0xff] }
 0x161   :  { %2671 = vmatpush3.msra.mxu1 %v765_v31  ;;  %v1043_v31 = vld [vmem:[%s4280_s1 + $0x58] sm:$0xff] }
 0x162   :  { %2672 = vmatprep.subr.mxu1 %v780_v4  ;;  %v1045_v4 = vld [vmem:[%s4280_s1 + $0x68] sm:$0xff] }
 0x163   :  { %2673 = vmatpush3.msra.mxu1 %v764_v13  ;;  %v1047_v13 = vld [vmem:[%s4280_s1 + $0x78] sm:$0xff] }
 0x164   :  { %2674 = vmatprep.subr.mxu1 %v779_v6  ;;  %v1049_v6 = vld [vmem:[%s4280_s1 + $0x88] sm:$0xff] }
 0x165   :  { %2675 = vmatpush3.msra.mxu1 %v763_v30  ;;  %v1051_v30 = vld [vmem:[%s4280_s1 + $0x98] sm:$0xff] }
 0x166   :  { %2676 = vmatprep.subr.mxu1 %v778_v39  ;;  %v1053_v39 = vld [vmem:[%s4280_s1 + $0xa8] sm:$0xff] }
 0x167   :  { %2677 = vmatpush3.msra.mxu1 %v762_v21  ;;  %v1055_v21 = vld [vmem:[%s4280_s1 + $0xb8] sm:$0xff] }
 0x168   :  { %2678 = vmatprep.subr.mxu1 %v777_v27  ;;  %v1057_v27 = vld [vmem:[%s4280_s1 + $0xc8] sm:$0xff] }
 0x169   :  { %2679 = vmatpush3.msra.mxu1 %v761_v46  ;;  %v1059_v46 = vld [vmem:[%s4280_s1 + $0xd8] sm:$0xff] }
 0x16a   :  { %2680 = vmatprep.subr.mxu1 %v776_v40  ;;  %v1061_v40 = vld [vmem:[%s4280_s1 + $0xe8] sm:$0xff] }
 0x16b   :  { %2681 = vmatpush3.msra.mxu1 %v760_v43  ;;  %v1063_v43 = vld [vmem:[%s4280_s1 + $0xf8] sm:$0xff] }
 0x16c   :  { %2682 = vmatprep.subr.mxu1 %v775_v22  ;;  %v1065_v22 = vld [vmem:[%s4280_s1 + $0x108] sm:$0xff] }
 0x16d   :  { %2683 = vmatpush3.msra.mxu1 %v759_v44  ;;  %v1067_v44 = vld [vmem:[%s4280_s1 + $0x118] sm:$0xff] }
 0x16e   :  { %2684 = vmatprep.subr.mxu1 %v774_v37  ;;  %v1069_v37 = vld [vmem:[%s4280_s1 + $0x128] sm:$0xff] }
 0x16f   :  { %2685 = vmatpush3.msra.mxu1 %v758_v47  ;;  %v1071_v47 = vld [vmem:[%s4280_s1 + $0x138] sm:$0xff] }
 0x170   :  { %2686 = vmatprep.subr.mxu1 %v773_v19  ;;  %v1073_v19 = vld [vmem:[%s4280_s1 + $0x148] sm:$0xff] }
 0x171   :  { %2687 = vmatpush3.msra.mxu1 %v757_v48  ;;  %v1075_v48 = vld [vmem:[%s4280_s1 + $0x158] sm:$0xff] }
 0x172   :  { %2688 = vmatprep.subr.mxu1 %v772_v38  ;;  %v1076_v38 = vld [vmem:[%s4280_s1 + $0x160] sm:$0xff] }
 0x173   :  { %2689 = vmatpush3.msra.mxu1 %v756_v9  ;;  %v1077_v9 = vld [vmem:[%s4280_s1 + $0x168] sm:$0xff] }
 0x174   :  { %2690 = vmatprep.subr.mxu1 %v771_v20  ;;  %v1078_v20 = vld [vmem:[%s4280_s1 + $0x170] sm:$0xff] }
 0x175   :  { %2691 = vmatpush3.msra.mxu1 %v755_v50  ;;  %v1079_v50 = vld [vmem:[%s4280_s1 + $0x178] sm:$0xff] }
 0x176   :  { %944 = vmatmul.mubr.f32.vlgmr.msra.gmra.mxu1 %v3545_v29  ;;  %2967 = vmatprep.subr.mxu1 %v3143_v56 }
 0x177   :  { %2968 = vmatpush3.msra.mxu1 %v949_v45  ;;  %2969 = vmatprep.mubr.msk.f32.mxu1 %vm3144_vm2, %v3143_v56  ;;  %v1080_v45 = vld [vmem:[%s4280_s1 + $0x180] sm:$0xff] }
 0x178   :  { %2972 = vmatprep.subr.msk.mxu1 %vm334_vm0, %v1099_v61 }
 0x1f6   :  { %v2657_v14 = vpop.f32.mrf.mxu1 }
 0x1f8   :  { %v2658_v51 = vpop.f32.mrf.mxu1 }
 0x1f9   :  { %v2659_v53 = vadd.f32 %v2658_v51, %v2657_v14  ;;  %v1082_v14 = vld [vmem:[%s4280_s1 + $0x190] sm:$0xff]  ;;  %v1083_v51 = vld [vmem:[%s4280_s1 + $0x198] sm:$0xff] }
 0x236   :  { %v2692_v35 = vpop.f32.mrf.mxu1 }
 0x238   :  { %v2693_v17 = vpop.f32.mrf.mxu1 }
 0x239   :  { %v2694_v54 = vadd.f32 %v2693_v17, %v2692_v35  ;;  %v1084_v35 = vld [vmem:[%s4280_s1 + $0x1a0] sm:$0xff]  ;;  %v1085_v17 = vld [vmem:[%s4280_s1 + $0x1a8] sm:$0xff] }
 0x23b   :  { %v946_v36 = vadd.f32 %v2694_v54, %v2659_v53  ;;  %v1086_v53 = vld [vmem:[%s4280_s1 + $0x1b0] sm:$0xff]  ;;  %v1087_v54 = vld [vmem:[%s4280_s1 + $0x1b8] sm:$0xff] }
 0x23d   :  { %2970 = vmatmul.mubr.msk.f32.vlgmr.msra.gmra.mxu1 %vm957_vm3, %v946_v36  ;;  %v1088_v36 = vld [vmem:[%s4280_s1 + $0x1c0] sm:$0xff] }
 0x23e   :  { %2973 = vmatpush3.msk.msra.mxu1 %vm334_vm0, %v1099_v61  ;;  %2980 = vmatprep.mubr.msk.f32.mxu1 %vm141_vm1, %v1032_v18  ;;  %v1081_v61 = vld [vmem:[%s4280_s1 + $0x188] sm:$0xff] }
 0x23f   :  { %2974 = vmatprep.subr.mxu1 %v1098_v57  ;;  %v1089_v18 = vld [vmem:[%s4280_s1 + $0x1c8] sm:$0xff] }
 0x240   :  { %2975 = vmatpush3.msra.mxu1 %v1098_v57  ;;  %v1090_v57 = vld [vmem:[%s4280_s1 + $0x1d0] sm:$0xff] }
 0x241   :  { %2976 = vmatprep.subr.mxu1 %v1097_v58 }
 0x242   :  { %2977 = vmatpush3.msra.mxu1 %v1097_v58  ;;  %v1091_v58 = vld [vmem:[%s4280_s1 + $0x1d8] sm:$0xff] }
 0x243   :  { %2978 = vmatprep.subr.mxu1 %v1096_v33 }
 0x244   :  { %2979 = vmatpush3.msra.mxu1 %v1096_v33  ;;  %v1092_v33 = vld [vmem:[%s4280_s1 + $0x1e0] sm:$0xff] }
 0x245   :  { %2981 = vmatmul.mubr.msk.f32.vlgmr.msra.gmra.mxu1 %vm141_vm1, %v1033_v15  ;;  %3110 = vmatprep.subr.mxu1 %v3143_v56  ;;  %v1093_v15 = vld [vmem:[%s4280_s1 + $0x1e8] sm:$0xff] }
 0x246   :  { %2983 = vmatprep.mubr.msk.f32.mxu1 %vm141_vm1, %v1034_v60  ;;  %v1094_v60 = vld [vmem:[%s4280_s1 + $0x1f0] sm:$0xff] }
 0x249   :  { %2984 = vmatmul.mubr.msk.f32.gmra.mxu1 %vm141_vm1, %v1035_v62  ;;  %v1095_v62 = vld [vmem:[%s4280_s1 + $0x1f8] sm:$0xff] }
 0x24a   :  { %2986 = vmatprep.mubr.msk.f32.mxu1 %vm141_vm1, %v1036_v63 }
 0x24d   :  { %2987 = vmatmul.mubr.msk.f32.gmra.mxu1 %vm141_vm1, %v1037_v34 }
 0x24e   :  { %2989 = vmatprep.mubr.msk.f32.mxu1 %vm141_vm1, %v1038_v0 }
 0x251   :  { %2990 = vmatmul.mubr.msk.f32.gmra.mxu1 %vm141_vm1, %v1039_v16 }
 0x252   :  { %2992 = vmatprep.mubr.msk.f32.mxu1 %vm141_vm1, %v1040_v55 }
 0x255   :  { %2993 = vmatmul.mubr.msk.f32.gmra.mxu1 %vm141_vm1, %v1041_v1 }
 0x256   :  { %2995 = vmatprep.mubr.msk.f32.mxu1 %vm141_vm1, %v1042_v3 }
 0x259   :  { %2996 = vmatmul.mubr.msk.f32.gmra.mxu1 %vm141_vm1, %v1043_v31 }
 0x25a   :  { %2998 = vmatprep.mubr.msk.f32.mxu1 %vm141_vm1, %v1044_v59 }
 0x25d   :  { %2999 = vmatmul.mubr.msk.f32.gmra.mxu1 %vm141_vm1, %v1045_v4 }
 0x25e   :  { %3001 = vmatprep.mubr.msk.f32.mxu1 %vm141_vm1, %v1046_v5 }
 0x261   :  { %3002 = vmatmul.mubr.msk.f32.gmra.mxu1 %vm141_vm1, %v1047_v13 }
 0x262   :  { %3004 = vmatprep.mubr.msk.f32.mxu1 %vm141_vm1, %v1048_v49 }
 0x265   :  { %3005 = vmatmul.mubr.msk.f32.gmra.mxu1 %vm141_vm1, %v1049_v6 }
 0x266   :  { %3007 = vmatprep.mubr.msk.f32.mxu1 %vm141_vm1, %v1050_v8 }
 0x269   :  { %3008 = vmatmul.mubr.msk.f32.gmra.mxu1 %vm141_vm1, %v1051_v30 }
 0x26a   :  { %3010 = vmatprep.mubr.msk.f32.mxu1 %vm141_vm1, %v1052_v52 }
 0x26d   :  { %3011 = vmatmul.mubr.msk.f32.gmra.mxu1 %vm141_vm1, %v1053_v39 }
 0x26e   :  { %3013 = vmatprep.mubr.msk.f32.mxu1 %vm141_vm1, %v1054_v24 }
 0x271   :  { %3014 = vmatmul.mubr.msk.f32.gmra.mxu1 %vm141_vm1, %v1055_v21 }
 0x272   :  { %3016 = vmatprep.mubr.msk.f32.mxu1 %vm141_vm1, %v1056_v42 }
 0x275   :  { %3017 = vmatmul.mubr.msk.f32.gmra.mxu1 %vm141_vm1, %v1057_v27 }
 0x276   :  { %3019 = vmatprep.mubr.msk.f32.mxu1 %vm141_vm1, %v1058_v41 }
 0x279   :  { %3020 = vmatmul.mubr.msk.f32.gmra.mxu1 %vm141_vm1, %v1059_v46 }
 0x27a   :  { %3022 = vmatprep.mubr.msk.f32.mxu1 %vm141_vm1, %v1060_v25 }
 0x27d   :  { %3023 = vmatmul.mubr.msk.f32.gmra.mxu1 %vm141_vm1, %v1061_v40 }
 0x27e   :  { %3025 = vmatprep.mubr.msk.f32.mxu1 %vm141_vm1, %v1062_v23 }
 0x281   :  { %3026 = vmatmul.mubr.msk.f32.gmra.mxu1 %vm141_vm1, %v1063_v43 }
 0x282   :  { %3028 = vmatprep.mubr.msk.f32.mxu1 %vm141_vm1, %v1064_v26 }
 0x285   :  { %3029 = vmatmul.mubr.msk.f32.gmra.mxu1 %vm141_vm1, %v1065_v22 }
 0x286   :  { %3031 = vmatprep.mubr.msk.f32.mxu1 %vm141_vm1, %v1066_v28 }
 0x289   :  { %3032 = vmatmul.mubr.msk.f32.gmra.mxu1 %vm141_vm1, %v1067_v44 }
 0x28a   :  { %3034 = vmatprep.mubr.msk.f32.mxu1 %vm141_vm1, %v1068_v10  ;;  %v4016_v10 = vld [vmem:[%s4281_s8] ss:$0 sm:$0xff] }
 0x28d   :  { %3035 = vmatmul.mubr.msk.f32.gmra.mxu1 %vm141_vm1, %v1069_v37 }
 0x28e   :  { %3037 = vmatprep.mubr.msk.f32.mxu1 %vm141_vm1, %v1070_v2 }
 0x291   :  { %3038 = vmatmul.mubr.msk.f32.gmra.mxu1 %vm141_vm1, %v1071_v47 }
 0x292   :  { %3040 = vmatprep.mubr.msk.f32.mxu1 %vm141_vm1, %v1072_v12 }
 0x295   :  { %3041 = vmatmul.mubr.msk.f32.gmra.mxu1 %vm141_vm1, %v1073_v19 }
 0x296   :  { %3043 = vmatprep.mubr.msk.f32.mxu1 %vm141_vm1, %v1074_v7 }
 0x299   :  { %3044 = vmatmul.mubr.msk.f32.gmra.mxu1 %vm141_vm1, %v1075_v48 }
 0x29a   :  { %3046 = vmatprep.mubr.msk.f32.mxu1 %vm141_vm1, %v1076_v38 }
 0x29d   :  { %3047 = vmatmul.mubr.msk.f32.gmra.mxu1 %vm141_vm1, %v1077_v9 }
 0x29e   :  { %3049 = vmatprep.mubr.msk.f32.mxu1 %vm141_vm1, %v1078_v20 }
 0x2a1   :  { %3050 = vmatmul.mubr.msk.f32.gmra.mxu1 %vm141_vm1, %v1079_v50 }
 0x2a2   :  { %3052 = vmatprep.mubr.msk.f32.mxu1 %vm141_vm1, %v1080_v45 }
 0x2a5   :  { %3053 = vmatmul.mubr.msk.f32.gmra.mxu1 %vm141_vm1, %v1081_v61 }
 0x2a6   :  { %3055 = vmatprep.mubr.msk.f32.mxu1 %vm141_vm1, %v1082_v14 }
 0x2a9   :  { %3056 = vmatmul.mubr.msk.f32.gmra.mxu1 %vm141_vm1, %v1083_v51 }
 0x2aa   :  { %3058 = vmatprep.mubr.msk.f32.mxu1 %vm141_vm1, %v1084_v35 }
 0x2ad   :  { %3059 = vmatmul.mubr.msk.f32.gmra.mxu1 %vm141_vm1, %v1085_v17 }
 0x2ae   :  { %3061 = vmatprep.mubr.msk.f32.mxu1 %vm141_vm1, %v1086_v53 }
 0x2b1   :  { %3062 = vmatmul.mubr.msk.f32.gmra.mxu1 %vm141_vm1, %v1087_v54 }
 0x2b2   :  { %3064 = vmatprep.mubr.msk.f32.mxu1 %vm141_vm1, %v1088_v36 }
 0x2b5   :  { %3065 = vmatmul.mubr.msk.f32.gmra.mxu1 %vm141_vm1, %v1089_v18 }
 0x2b6   :  { %3067 = vmatprep.mubr.msk.f32.mxu1 %vm141_vm1, %v1090_v57 }
 0x2b9   :  { %3068 = vmatmul.mubr.msk.f32.gmra.mxu1 %vm141_vm1, %v1091_v58 }
 0x2ba   :  { %3070 = vmatprep.mubr.msk.f32.mxu1 %vm141_vm1, %v1092_v33 }
 0x2bd   :  { %3071 = vmatmul.mubr.msk.f32.gmra.mxu1 %vm141_vm1, %v1093_v15 }
 0x2be   :  { %3073 = vmatprep.mubr.msk.f32.mxu1 %vm141_vm1, %v1094_v60 }
 0x2c1   :  { %3074 = vmatmul.mubr.msk.f32.gmra.mxu1 %vm141_vm1, %v1095_v62 }
 0x2c2   :  { %3124 = vmatprep.mubr.msk.f32.mxu1 %vm3144_vm2, %v3143_v56 }
 0x2fd   :  { %v3981_v63 = vpop.f32.mrf.mxu1 }
 0x2ff   :  { %v2971_v34 = vpop.f32.mrf.mxu1 }
 0x305   :  { %v3983_v0 = vpop.f32.mrf.mxu1 }
 0x307   :  { %v3985_v16 = vpop.f32.mrf.mxu1 }
 0x309   :  { %v3987_v55 = vpop.f32.mrf.mxu1 }
 0x30b   :  { %v3989_v1 = vpop.f32.mrf.mxu1 }
 0x30d   :  { %v3991_v3 = vpop.f32.mrf.mxu1 }
 0x30f   :  { %v3993_v31 = vpop.f32.mrf.mxu1 }
 0x311   :  { %v3995_v59 = vpop.f32.mrf.mxu1 }
 0x313   :  { %v3997_v4 = vpop.f32.mrf.mxu1 }
 0x315   :  { %v2994_v5 = vpop.f32.mrf.mxu1 }
 0x317   :  { %v3999_v13 = vpop.f32.mrf.mxu1 }
 0x319   :  { %v2997_v49 = vpop.f32.mrf.mxu1 }
 0x31a   :  { %v1424_v54 = vadd.f32 %v2997_v49, %v4016_v10  ;;  %v1414_v49 = vadd.f32 %v2994_v5, %v4016_v10  ;;  %v1404_v5 = vadd.f32 %v3995_v59, %v4016_v10  ;;  %v1394_v59 = vadd.f32 %v3991_v3, %v4016_v10 }
 0x31b   :  { %v1418_v6 = vpop.f32.mrf.mxu1 }
 0x31c   :  { %v1419_v33 = vadd.f32 %v4016_v10, %v1418_v6  ;;  %v1409_v6 = vadd.f32 %v4016_v10, %v3999_v13  ;;  %v1399_v13 = vadd.f32 %v4016_v10, %v3997_v4 }
 0x31d   :  { %v3000_v8 = vpop.f32.mrf.mxu1 }
 0x31e   :  { %v1434_v9 = vadd.f32 %v3000_v8, %v4016_v10  ;;  %v1698_v8 = vmax.f32 %v1424_v54, 0.0  ;;  %v1374_v54 = vadd.f32 %v3983_v0, %v4016_v10 }
 0x31f   :  { %v1428_v30 = vpop.f32.mrf.mxu1 }
 0x320   :  { %v1429_v14 = vadd.f32 %v4016_v10, %v1428_v30  ;;  %v1700_v36 = vmax.f32 %v1434_v9, 0.0  ;;  %v1693_v9 = vmax.f32 %v1399_v13, 0.0 }
 0x321   :  { %v3003_v52 = vpop.f32.mrf.mxu1 }
 0x322   :  { %v1444_v37 = vadd.f32 %v3003_v52, %v4016_v10  ;;  %v1699_v15 = vmax.f32 %v1429_v14, 0.0 }
 0x323   :  { %v1438_v39 = vpop.f32.mrf.mxu1 }
 0x324   :  { %v1439_v12 = vadd.f32 %v4016_v10, %v1438_v39  ;;  %v1702_v20 = vmax.f32 %v1444_v37, 0.0 }
 0x325   :  { %v4001_v24 = vpop.f32.mrf.mxu1 }
 0x326   :  { %v1701_v51 = vmax.f32 %v1439_v12, 0.0 }
 0x327   :  { %v4003_v21 = vpop.f32.mrf.mxu1 }
 0x329   :  { %v4005_v42 = vpop.f32.mrf.mxu1 }
 0x32b   :  { %v4007_v27 = vpop.f32.mrf.mxu1 }
 0x32d   :  { %v4009_v41 = vpop.f32.mrf.mxu1 }
 0x32f   :  { %v4011_v46 = vpop.f32.mrf.mxu1 }
 0x331   :  { %v3015_v25 = vpop.f32.mrf.mxu1 }
 0x333   :  { %v1478_v40 = vpop.f32.mrf.mxu1 }
 0x335   :  { %v3018_v23 = vpop.f32.mrf.mxu1 }
 0x336   :  { %v1494_v62 = vadd.f32 %v3018_v23, %v4016_v10  ;;  %v1484_v23 = vadd.f32 %v3015_v25, %v4016_v10  ;;  %v1474_v25 = vadd.f32 %v4009_v41, %v4016_v10  ;;  %v1464_v41 = vadd.f32 %v4005_v42, %v4016_v10 }
 0x337   :  { %v1488_v43 = vpop.f32.mrf.mxu1  ;;  %v1454_v42 = vadd.f32 %v4001_v24, %v4016_v10 }
 0x338   :  { %v1489_v52 = vadd.f32 %v4016_v10, %v1488_v43  ;;  %v1479_v43 = vadd.f32 %v4016_v10, %v1478_v40  ;;  %v1469_v40 = vadd.f32 %v4016_v10, %v4011_v46  ;;  %v1708_v3 = vmax.f32 %v1474_v25, 0.0 }
 0x339   :  { %v3021_v26 = vpop.f32.mrf.mxu1  ;;  %v1459_v46 = vadd.f32 %v4016_v10, %v4007_v27  ;;  %v1449_v27 = vadd.f32 %v4016_v10, %v4003_v21  ;;  %v1704_v24 = vmax.f32 %v1454_v42, 0.0 }
 0x33a   :  { %v1504_v17 = vadd.f32 %v3021_v26, %v4016_v10  ;;  %v1697_v26 = vmax.f32 %v1419_v33, 0.0  ;;  %v1709_v4 = vmax.f32 %v1479_v43, 0.0 }
 0x33b   :  { %v1498_v22 = vpop.f32.mrf.mxu1  ;;  %v1703_v0 = vmax.f32 %v1449_v27, 0.0 }
 0x33c   :  { %v1499_v57 = vadd.f32 %v4016_v10, %v1498_v22  ;;  %v1714_v34 = vmax.f32 %v1504_v17, 0.0 }
 0x33d   :  { %v3024_v28 = vpop.f32.mrf.mxu1 }
 0x33e   :  { %v1514_v7 = vadd.f32 %v3024_v28, %v4016_v10  ;;  %v1713_v39 = vmax.f32 %v1499_v57, 0.0  ;;  %v1712_v28 = vmax.f32 %v1494_v62, 0.0  ;;  %v1688_v62 = vmax.f32 %v1374_v54, 0.0 }
 0x33f   :  { %v1508_v44 = vpop.f32.mrf.mxu1 }
 0x340   :  { %v1509_v45 = vadd.f32 %v4016_v10, %v1508_v44  ;;  %v1716_v53 = vmax.f32 %v1514_v7, 0.0  ;;  %v1696_v44 = vmax.f32 %v1414_v49, 0.0  ;;  %v1694_v7 = vmax.f32 %v1404_v5, 0.0 }
 0x341   :  { %v3027_v2 = vpop.f32.mrf.mxu1 }
 0x342   :  { %v1524_v47 = vadd.f32 %v3027_v2, %v4016_v10  ;;  %v1715_v58 = vmax.f32 %v1509_v45, 0.0  ;;  %v1711_v2 = vmax.f32 %v1489_v52, 0.0  ;;  %v1384_v45 = vadd.f32 %v3987_v55, %v4016_v10 }
 0x343   :  { %v1518_v19 = vpop.f32.mrf.mxu1  ;;  %v1706_v55 = vmax.f32 %v1464_v41, 0.0 }
 0x344   :  { %v1718_v48 = vmax.f32 %v1524_v47, 0.0  ;;  %v1519_v38 = vadd.f32 %v4016_v10, %v1518_v19  ;;  %v1695_v47 = vmax.f32 %v1409_v6, 0.0  ;;  %v1710_v19 = vmax.f32 %v1484_v23, 0.0 }
 0x345   :  { %v4024_v50 = vpop.f32.mrf.mxu1 }
 0x346   :  { %v1717_v61 = vmax.f32 %v1519_v38, 0.0  ;;  %2765 = vmatprep.subr.mxu0 %v1718_v48  ;;  %v1389_v38 = vadd.f32 %v4016_v10, %v3993_v31  ;;  %v1707_v31 = vmax.f32 %v1469_v40, 0.0 }
 0x347   :  { %v4028_v35 = vpop.f32.mrf.mxu1  ;;  %2766 = vmatpush3.msra.mxu0 %v1702_v20 }
 0x348   :  { %2767 = vmatprep.subr.mxu0 %v1717_v61  ;;  %v1692_v61 = vmax.f32 %v1394_v59, 0.0  ;;  %v1691_v17 = vmax.f32 %v1389_v38, 0.0 }
 0x349   :  { %v4032_v18 = vpop.f32.mrf.mxu1  ;;  %2768 = vmatpush3.msra.mxu0 %v1701_v51  ;;  %v1379_v51 = vadd.f32 %v4016_v10, %v3989_v1  ;;  %v1369_v1 = vadd.f32 %v4016_v10, %v3985_v16 }
 0x34a   :  { %2769 = vmatprep.subr.mxu0 %v1716_v53 }
 0x34b   :  { %v4036_v60 = vpop.f32.mrf.mxu1  ;;  %2770 = vmatpush3.msra.mxu0 %v1700_v36  ;;  %v1690_v36 = vmax.f32 %v1384_v45, 0.0  ;;  %v1689_v33 = vmax.f32 %v1379_v51, 0.0  ;;  %v1687_v49 = vmax.f32 %v1369_v1, 0.0 }
 0x34c   :  { %2771 = vmatprep.subr.mxu0 %v1715_v58  ;;  %v1705_v58 = vmax.f32 %v1459_v46, 0.0 }
 0x34d   :  { %v4040_v30 = vpop.f32.mrf.mxu1  ;;  %2772 = vmatpush3.msra.mxu0 %v1699_v15 }
 0x34e   :  { %2773 = vmatprep.subr.mxu0 %v1714_v34 }
 0x34f   :  { %v4045_v22 = vpop.f32.mrf.mxu1  ;;  %2774 = vmatpush3.msra.mxu0 %v1698_v8 }
 0x350   :  { %2775 = vmatprep.subr.mxu0 %v1713_v39 }
 0x351   :  { %v4050_v37 = vpop.f32.mrf.mxu1  ;;  %2776 = vmatpush3.msra.mxu0 %v1697_v26 }
 0x352   :  { %2777 = vmatprep.subr.mxu0 %v1712_v28 }
 0x353   :  { %v4055_v12 = vpop.f32.mrf.mxu1  ;;  %2778 = vmatpush3.msra.mxu0 %v1696_v44 }
 0x354   :  { %2779 = vmatprep.subr.mxu0 %v1711_v2 }
 0x355   :  { %v4061_v48 = vpop.f32.mrf.mxu1  ;;  %2780 = vmatpush3.msra.mxu0 %v1695_v47 }
 0x356   :  { %2781 = vmatprep.subr.mxu0 %v1710_v19 }
 0x357   :  { %v4067_v20 = vpop.f32.mrf.mxu1  ;;  %2782 = vmatpush3.msra.mxu0 %v1694_v7 }
 0x358   :  { %2783 = vmatprep.subr.mxu0 %v1709_v4 }
 0x359   :  { %v4073_v14 = vpop.f32.mrf.mxu1  ;;  %2784 = vmatpush3.msra.mxu0 %v1693_v9 }
 0x35a   :  { %2785 = vmatprep.subr.mxu0 %v1708_v3  ;;  %v1584_v51 = vadd.f32 %v4073_v14, %v4016_v10 }
 0x35b   :  { %v4079_v53 = vpop.f32.mrf.mxu1  ;;  %2786 = vmatpush3.msra.mxu0 %v1692_v61 }
 0x35c   :  { %2787 = vmatprep.subr.mxu0 %v1707_v31  ;;  %v1579_v54 = vadd.f32 %v4016_v10, %v4079_v53  ;;  %v1730_v1 = vmax.f32 %v1584_v51, 0.0 }
 0x35d   :  { %v3048_v57 = vpop.f32.mrf.mxu1  ;;  %2788 = vmatpush3.msra.mxu0 %v1691_v17 }
 0x35e   :  { %2789 = vmatprep.subr.mxu0 %v1706_v55  ;;  %v1594_v38 = vadd.f32 %v3048_v57, %v4016_v10 }
 0x35f   :  { %v1588_v15 = vpop.f32.mrf.mxu1  ;;  %2790 = vmatpush3.msra.mxu0 %v1690_v36 }
 0x360   :  { %2791 = vmatprep.subr.mxu0 %v1705_v58  ;;  %v1589_v45 = vadd.f32 %v4016_v10, %v1588_v15  ;;  %v1732_v17 = vmax.f32 %v1594_v38, 0.0  ;;  %v1574_v58 = vadd.f32 %v4061_v48, %v4016_v10  ;;  %v1569_v15 = vadd.f32 %v4016_v10, %v4067_v20 }
 0x361   :  { %v3051_v34 = vpop.f32.mrf.mxu1  ;;  %2792 = vmatpush3.msra.mxu0 %v1689_v33 }
 0x362   :  { %2793 = vmatprep.subr.mxu0 %v1704_v24  ;;  %v1731_v36 = vmax.f32 %v1589_v45, 0.0  ;;  %v1729_v24 = vmax.f32 %v1579_v54, 0.0  ;;  %v2061_v54 = vld [vmem:[%s4286_s13 + $0x10] sm:$0xff] }
 0x363   :  { %v1598_v8 = vpop.f32.mrf.mxu1  ;;  %2794 = vmatpush3.msra.mxu0 %v1688_v62 }
 0x364   :  { %2795 = vmatprep.subr.mxu0 %v1703_v0  ;;  %v1599_v19 = vadd.f32 %v4016_v10, %v1598_v8  ;;  %v1728_v0 = vmax.f32 %v1574_v58, 0.0  ;;  %v1559_v8 = vadd.f32 %v4016_v10, %v4055_v12  ;;  %v2059_v58 = vld [vmem:[%s4286_s13] sm:$0xff] }
 0x365   :  { %v4089_v21 = vpop.f32.mrf.mxu1  ;;  %2796 = vmatpush3.msra.mxu0 %v1687_v49 }
 0x366   :  { %1816 = vmatmul.mubr.f32.vlgmr.msra.gmra.mxu0 %v3523_v11  ;;  %v1604_v11 = vadd.f32 %v3051_v34, %v4016_v10  ;;  %v1733_v61 = vmax.f32 %v1599_v19, 0.0  ;;  %v1564_v34 = vadd.f32 %v4050_v37, %v4016_v10  ;;  %v1725_v12 = vmax.f32 %v1559_v8, 0.0 }
 0x367   :  { %v4092_v16 = vpop.f32.mrf.mxu1  ;;  %1885 = vmatprep.mubr.f32.mxu0 %v3637_v32 }
 0x368   :  { %v1734_v9 = vmax.f32 %v1604_v11, 0.0 }
 0x369   :  { %v4095_v52 = vpop.f32.mrf.mxu1 }
 0x36b   :  { %v4097_v39 = vpop.f32.mrf.mxu1 }
 0x36d   :  { %v3060_v6 = vpop.f32.mrf.mxu1 }
 0x36e   :  { %v1634_v20 = vadd.f32 %v3060_v6, %v4016_v10  ;;  %v1624_v6 = vadd.f32 %v4095_v52, %v4016_v10  ;;  %v1614_v52 = vadd.f32 %v4089_v21, %v4016_v10 }
 0x36f   :  { %v4099_v26 = vpop.f32.mrf.mxu1 }
 0x370   :  { %v1629_v37 = vadd.f32 %v4016_v10, %v4099_v26  ;;  %v1619_v26 = vadd.f32 %v4016_v10, %v4097_v39  ;;  %v1609_v39 = vadd.f32 %v4016_v10, %v4092_v16 }
 0x371   :  { %v3063_v23 = vpop.f32.mrf.mxu1 }
 0x372   :  { %v1644_v53 = vadd.f32 %v3063_v23, %v4016_v10  ;;  %v1554_v23 = vadd.f32 %v4040_v30, %v4016_v10  ;;  %v1544_v30 = vadd.f32 %v4032_v18, %v4016_v10  ;;  %v1739_v11 = vmax.f32 %v1629_v37, 0.0 }
 0x373   :  { %v1638_v28 = vpop.f32.mrf.mxu1  ;;  %v1534_v18 = vadd.f32 %v4024_v50, %v4016_v10  ;;  %v2150_v50 = vld [vmem:[%s4283_s15 + $0x30] sm:$0x3] }
 0x374   :  { %v1639_v48 = vadd.f32 %v4016_v10, %v1638_v28  ;;  %v1722_v19 = vmax.f32 %v1544_v30, 0.0  ;;  %3111 = vmatpush3.msk.msra.mxu1 %vm2235_vm4, %v2150_v50 }
 0x375   :  { %v3066_v5 = vpop.f32.mrf.mxu1  ;;  %v1720_v21 = vmax.f32 %v1534_v18, 0.0  ;;  %3112 = vmatprep.subr.mxu1 %v3143_v56 }
 0x376   :  { %v1654_v57 = vadd.f32 %v3066_v5, %v4016_v10  ;;  %v1727_v5 = vmax.f32 %v1569_v15, 0.0  ;;  %v1741_v28 = vmax.f32 %v1639_v48, 0.0  ;;  %v2144_v15 = vld [vmem:[%s4283_s15] sm:$0xff] }
 0x377   :  { %v1648_v44 = vpop.f32.mrf.mxu1  ;;  %v2546_v48 = vld [vmem:[%s4288_s12] ss:$0 sm:$0xff] }
 0x378   :  { %v1649_v14 = vadd.f32 %v4016_v10, %v1648_v44  ;;  %v1744_v62 = vmax.f32 %v1654_v57, 0.0  ;;  %v1742_v44 = vmax.f32 %v1644_v53, 0.0  ;;  %v2060_v57 = vld [vmem:[%s4286_s13 + $0x8] sm:$0xff] }
 0x379   :  { %v3069_v43 = vpop.f32.mrf.mxu1 }
 0x37a   :  { %v1664_v46 = vadd.f32 %v3069_v43, %v4016_v10  ;;  %v1743_v49 = vmax.f32 %v1649_v14, 0.0  ;;  %v1726_v43 = vmax.f32 %v1564_v34, 0.0  ;;  %v2146_v14 = vld [vmem:[%s4283_s15 + $0x10] sm:$0xff] }
 0x37b   :  { %v1658_v2 = vpop.f32.mrf.mxu1 }
 0x37c   :  { %v1659_v42 = vadd.f32 %v4016_v10, %v1658_v2  ;;  %v1746_v27 = vmax.f32 %v1664_v46, 0.0  ;;  %v1549_v2 = vadd.f32 %v4016_v10, %v4045_v22  ;;  %v1539_v22 = vadd.f32 %v4016_v10, %v4036_v60  ;;  %v2476_v46 = vld [vmem:[%s4285_s6] ss:$0 sm:$0xff] }
 0x37d   :  { %v3072_v13 = vpop.f32.mrf.mxu1  ;;  %v1529_v60 = vadd.f32 %v4016_v10, %v4028_v35  ;;  %v1028_v51 = vadd.f32 %v2476_v46, %v3981_v63  ;;  %v2062_v63 = vld [vmem:[%s4286_s13 + $0x18] sm:$0xff] }
 0x37e   :  { %v1674_v7 = vadd.f32 %v3072_v13, %v4016_v10  ;;  %v1745_v33 = vmax.f32 %v1659_v42, 0.0  ;;  %v1740_v13 = vmax.f32 %v1634_v20, 0.0  ;;  %v1973_v42 = vld [vmem:[%s4284_s11] sm:$0xff] }
 0x37f   :  { %v1668_v47 = vpop.f32.mrf.mxu1  ;;  %v1719_v38 = vmax.f32 %v1529_v60, 0.0 }
 0x380   :  { %v1669_v41 = vadd.f32 %v4016_v10, %v1668_v47  ;;  %v1748_v31 = vmax.f32 %v1674_v7, 0.0  ;;  %v1724_v47 = vmax.f32 %v1554_v23, 0.0  ;;  %v1721_v7 = vmax.f32 %v1539_v22, 0.0  ;;  %v2151_v23 = vld [vmem:[%s4289_s16] sm:$0xff] }
 0x381   :  { %v3075_v25 = vpop.f32.mrf.mxu1 }
 0x382   :  { %v1684_v32 = vadd.f32 %v3075_v25, %v4016_v10  ;;  %v1747_v55 = vmax.f32 %v1669_v41, 0.0  ;;  %v1723_v25 = vmax.f32 %v1549_v2, 0.0 }
 0x383   :  { %v1678_v59 = vpop.f32.mrf.mxu1 }
 0x384   :  { %v1750_v40 = vmax.f32 %v1684_v32, 0.0  ;;  %v1679_v4 = vadd.f32 %v4016_v10, %v1678_v59  ;;  %v1738_v32 = vmax.f32 %v1624_v6, 0.0  ;;  %v1737_v59 = vmax.f32 %v1619_v26, 0.0  ;;  %v1891_v10 = vld [vmem:[%s4282_s9] sm:$0xff]  ;;  %v2320_v6 = vld [vmem:[%s4291_s18 + $0x18] sm:$0xff]  ;;  %v2318_v26 = vld [vmem:[%s4291_s18 + $0x8] sm:$0xff] }
 0x386   :  { %v1749_v3 = vmax.f32 %v1679_v4, 0.0  ;;  %2800 = vmatprep.subr.mxu0 %v1750_v40  ;;  %v1736_v40 = vmax.f32 %v1614_v52, 0.0  ;;  %v1735_v4 = vmax.f32 %v1609_v39, 0.0 }
 0x387   :  { %2801 = vmatpush3.msra.mxu0 %v1734_v9 }
 0x388   :  { %2802 = vmatprep.subr.mxu0 %v1749_v3 }
 0x389   :  { %2803 = vmatpush3.msra.mxu0 %v1733_v61  ;;  %v1976_v61 = vld [vmem:[%s4284_s11 + $0x18] sm:$0xff] }
 0x38a   :  { %2804 = vmatprep.subr.mxu0 %v1748_v31  ;;  %v1975_v31 = vld [vmem:[%s4284_s11 + $0x10] sm:$0xff] }
 0x38b   :  { %2805 = vmatpush3.msra.mxu0 %v1732_v17  ;;  %v1974_v17 = vld [vmem:[%s4284_s11 + $0x8] sm:$0xff] }
 0x38c   :  { %2806 = vmatprep.subr.mxu0 %v1747_v55  ;;  %v1031_v55 = vmax.f32 %v1028_v51, 0.0 }
 0x38d   :  { %2807 = vmatpush3.msra.mxu0 %v1731_v36  ;;  %v2149_v36 = vld [vmem:[%s4283_s15 + $0x28] sm:$0xff] }
 0x38e   :  { %2808 = vmatprep.subr.mxu0 %v1746_v27  ;;  %3113 = vmatpush3.msra.mxu1 %v2149_v36  ;;  %v2148_v27 = vld [vmem:[%s4283_s15 + $0x20] sm:$0xff] }
 0x38f   :  { %2809 = vmatpush3.msra.mxu0 %v1730_v1  ;;  %3114 = vmatprep.subr.mxu1 %v3143_v56  ;;  %v2147_v1 = vld [vmem:[%s4283_s15 + $0x18] sm:$0xff] }
 0x390   :  { %2810 = vmatprep.subr.mxu0 %v1745_v33  ;;  %3115 = vmatpush3.msra.mxu1 %v2148_v27  ;;  %v2145_v33 = vld [vmem:[%s4283_s15 + $0x8] sm:$0xff] }
 0x391   :  { %2811 = vmatpush3.msra.mxu0 %v1729_v24  ;;  %3116 = vmatprep.subr.mxu1 %v3143_v56  ;;  %v2544_v24 = vld [vmem:[%s4287_s10] ss:$0 sm:$0xff] }
 0x392   :  { %2812 = vmatprep.subr.mxu0 %v1744_v62  ;;  %3117 = vmatpush3.msra.mxu1 %v2147_v1 }
 0x393   :  { %2813 = vmatpush3.msra.mxu0 %v1728_v0  ;;  %3118 = vmatprep.subr.mxu1 %v3143_v56 }
 0x394   :  { %2814 = vmatprep.subr.mxu0 %v1743_v49  ;;  %3119 = vmatpush3.msra.mxu1 %v2146_v14 }
 0x395   :  { %2815 = vmatpush3.msra.mxu0 %v1727_v5  ;;  %3120 = vmatprep.subr.mxu1 %v3143_v56 }
 0x396   :  { %2816 = vmatprep.subr.mxu0 %v1742_v44  ;;  %3121 = vmatpush3.msra.mxu1 %v2145_v33  ;;  %v2152_v44 = vld [vmem:[%s4289_s16 + $0x8] sm:$0x3f] }
 0x397   :  { %2817 = vmatpush3.msra.mxu0 %v1726_v43  ;;  %3122 = vmatprep.subr.mxu1 %v3143_v56  ;;  %v2548_v43 = vld [vmem:[%s4290_s14] ss:$0 sm:$0xff] }
 0x398   :  { %2818 = vmatprep.subr.mxu0 %v1741_v28  ;;  %3123 = vmatpush3.msra.mxu1 %v2144_v15 }
 0x399   :  { %2819 = vmatpush3.msra.mxu0 %v1725_v12 }
 0x39a   :  { %2820 = vmatprep.subr.mxu0 %v1740_v13 }
 0x39b   :  { %2821 = vmatpush3.msra.mxu0 %v1724_v47  ;;  %v2319_v47 = vld [vmem:[%s4291_s18 + $0x10] sm:$0xff] }
 0x39c   :  { %2822 = vmatprep.subr.mxu0 %v1739_v11  ;;  %v2317_v11 = vld [vmem:[%s4291_s18] sm:$0xff] }
 0x39d   :  { %2823 = vmatpush3.msra.mxu0 %v1723_v25  ;;  %v2554_v25 = vld [vmem:[%s4292_s17] ss:$0 sm:$0xff] }
 0x39e   :  { %2824 = vmatprep.subr.mxu0 %v1738_v32 }
 0x39f   :  { %2825 = vmatpush3.msra.mxu0 %v1722_v19  ;;  %v2555_v19 = vld [vmem:[%s4293_s19] ss:$0 sm:$0xff] }
 0x3a0   :  { %2826 = vmatprep.subr.mxu0 %v1737_v59 }
 0x3a1   :  { %2827 = vmatpush3.msra.mxu0 %v1721_v7 }
 0x3a2   :  { %2828 = vmatprep.subr.mxu0 %v1736_v40 }
 0x3a3   :  { %2829 = vmatpush3.msra.mxu0 %v1720_v21 }
 0x3a4   :  { %2830 = vmatprep.subr.mxu0 %v1735_v4 }
 0x3a5   :  { %2831 = vmatpush3.msra.mxu0 %v1719_v38 }
 0x3a6   :  { %1886 = vmatmul.mubr.f32.vlgmr.msra.gmra.mxu0 %v3545_v29  ;;  %3076 = vmatprep.subr.mxu0 %v3143_v56 }
 0x3a7   :  { %3078 = vmatprep.mubr.msk.f32.mxu0 %vm3144_vm2, %v3143_v56  ;;  %3077 = vmatpush3.msra.mxu0 %v1891_v10 }
 0x3a8   :  { %3081 = vmatprep.subr.mxu0 %v3143_v56 }
 0x426   :  { %v2797_v29 = vpop.f32.mrf.mxu0 }
 0x428   :  { %v2798_v35 = vpop.f32.mrf.mxu0 }
 0x429   :  { %v2799_v41 = vadd.f32 %v2798_v35, %v2797_v29 }
 0x466   :  { %v2832_v16 = vpop.f32.mrf.mxu0 }
 0x468   :  { %v2833_v9 = vpop.f32.mrf.mxu0 }
 0x469   :  { %v2834_v3 = vadd.f32 %v2833_v9, %v2832_v16 }
 0x46b   :  { %v1888_v45 = vadd.f32 %v2834_v3, %v2799_v41 }
 0x46d   :  { %3079 = vmatmul.mubr.msk.f32.vlgmr.msra.gmra.mxu0 %vm957_vm3, %v1888_v45 }
 0x46e   :  { %3082 = vmatpush3.msra.mxu0 %v1976_v61  ;;  %3089 = vmatprep.mubr.msk.f32.mxu0 %vm3144_vm2, %v3143_v56 }
 0x46f   :  { %3083 = vmatprep.subr.mxu0 %v3143_v56 }
 0x470   :  { %3084 = vmatpush3.msra.mxu0 %v1975_v31 }
 0x471   :  { %3085 = vmatprep.subr.mxu0 %v3143_v56 }
 0x472   :  { %3086 = vmatpush3.msra.mxu0 %v1974_v17 }
 0x473   :  { %3087 = vmatprep.subr.mxu0 %v3143_v56 }
 0x474   :  { %3088 = vmatpush3.msra.mxu0 %v1973_v42 }
 0x475   :  { %3090 = vmatmul.mubr.msk.f32.vlgmr.msra.gmra.mxu0 %vm1984_vm5, %v1031_v55  ;;  %3092 = vmatprep.subr.mxu0 %v3143_v56 }
 0x476   :  { %3093 = vmatpush3.msra.mxu0 %v2062_v63  ;;  %3100 = vmatprep.mubr.msk.f32.mxu0 %vm3144_vm2, %v3143_v56 }
 0x477   :  { %3094 = vmatprep.subr.mxu0 %v3143_v56 }
 0x478   :  { %3095 = vmatpush3.msra.mxu0 %v2061_v54 }
 0x479   :  { %3096 = vmatprep.subr.mxu0 %v3143_v56 }
 0x47a   :  { %3097 = vmatpush3.msra.mxu0 %v2060_v57 }
 0x47b   :  { %3098 = vmatprep.subr.mxu0 %v3143_v56 }
 0x47c   :  { %3099 = vmatpush3.msra.mxu0 %v2059_v58 }
 0x47d   :  { %3103 = vmatprep.subr.mxu0 %v3143_v56 }
 0x52d   :  { %v1968_v53 = vpop.f32.mrf.mxu0 }
 0x52e   :  { %v1969_v62 = vadd.f32 %v2544_v24, %v1968_v53 }
 0x52f   :  { %v3080_v34 = vpop.f32.mrf.mxu0 }
 0x530   :  { %v1972_v0 = vmax.f32 %v1969_v62, 0.0 }
 0x532   :  { %3101 = vmatmul.mubr.msk.f32.vlgmr.msra.gmra.mxu0 %vm1984_vm5, %v1972_v0 }
 0x533   :  { %3107 = vmatprep.mubr.msk.f32.mxu0 %vm3144_vm2, %v3143_v56  ;;  %3104 = vmatpush3.msk.msra.mxu0 %vm2157_vm7, %v2152_v44 }
 0x534   :  { %3105 = vmatprep.subr.mxu0 %v3143_v56 }
 0x535   :  { %v2054_v49 = vpop.f32.mrf.mxu0  ;;  %3106 = vmatpush3.msra.mxu0 %v2151_v23 }
 0x536   :  { %v2055_v8 = vadd.f32 %v2546_v48, %v2054_v49  ;;  %3127 = vmatprep.subr.mxu0 %v3143_v56 }
 0x537   :  { %v3091_v5 = vpop.f32.mrf.mxu0 }
 0x538   :  { %v2058_v20 = vmax.f32 %v2055_v8, 0.0 }
 0x53a   :  { %3125 = vmatmul.mubr.msk.f32.vlgmr.msra.gmra.mxu1 %vm2231_vm6, %v2058_v20 }
 0x5f2   :  { %v2139_v37 = vpop.f32.mrf.mxu0 }
 0x5f3   :  { %v2140_v28 = vadd.f32 %v2548_v43, %v2139_v37 }
 0x5f4   :  { %v3102_v2 = vpop.f32.mrf.mxu0 }
 0x5f5   :  { %v2143_v12 = vmax.f32 %v2140_v28, 0.0 }
 0x5f7   :  { %3108 = vmatmul.mubr.msk.f32.vlgmr.msra.gmra.mxu0 %vm2153_vm8, %v2143_v12 }
 0x5f8   :  { %3128 = vmatpush3.msra.mxu0 %v2320_v6  ;;  %3135 = vmatprep.mubr.msk.f32.mxu0 %vm3144_vm2, %v3143_v56 }
 0x5f9   :  { %3129 = vmatprep.subr.mxu0 %v3143_v56 }
 0x5fa   :  { %v2305_v13 = vpop.f32.mrf.mxu1  ;;  %3130 = vmatpush3.msra.mxu0 %v2319_v47 }
 0x5fb   :  { %3131 = vmatprep.subr.mxu0 %v3143_v56 }
 0x5fc   :  { %v3126_v30 = vpop.f32.mrf.mxu1  ;;  %3132 = vmatpush3.msra.mxu0 %v2318_v26 }
 0x5fd   :  { %3133 = vmatprep.subr.mxu0 %v3143_v56 }
 0x5fe   :  { %3134 = vmatpush3.msra.mxu0 %v2317_v11 }
 0x6b7   :  { %v2227_v22 = vpop.f32.mrf.mxu0 }
 0x6b8   :  { %v2306_v52 = vadd.f32 %v2305_v13, %v2227_v22 }
 0x6b9   :  { %v3109_v32 = vpop.f32.mrf.mxu0 }
 0x6ba   :  { %v2316_v18 = vadd.f32 %v2554_v25, %v2306_v52 }
 0x6bc   :  { %3136 = vmatmul.mubr.msk.f32.vlgmr.msra.gmra.mxu0 %vm1984_vm5, %v2316_v18 }
 0x77c   :  { %v2397_v39 = vpop.f32.mrf.mxu0 }
 0x77d   :  { %v2398_v59 = vadd.f32 %v2555_v19, %v2397_v39 }
 0x77e   :  { %v3137_v60 = vpop.f32.mrf.mxu0 }
 0x77f   :  { %vm2401_vm9 = vcmp.ge.f32.partialorder %v2398_v59, 0.0  ;;  %v2402_v56 = vmul.f32 0.01, %v2398_v59 }
 0x781   :  { %v2403_v7 = vsel %vm2401_vm9, %v2398_v59, %v2402_v56 }
 0x782   :  { %2405 = vst.msk [vmem:[%s4294_s20] sm:$0x3] %vm2404_vm10, %v2403_v7 }

</bundles_post_ra>
